<compile_context>
chip_gen: v5e
topology: v5e:2x2
jax: 0.10.0
libtpu: 0.0.40
codegen_flags: <defaults>
</compile_context>

<pallas_src>
import functools
import math

import jax
import jax.numpy as jnp
from jax.experimental import pallas as pl
from jax.experimental.pallas import tpu as pltpu

# ----------------------------- small ViT config -----------------------------
PATCH = 16
IMG = 32                  # -> (32/16)^2 = 4 patches, 5 tokens with CLS
CHANNELS = 3
HIDDEN = 64               # vit_b_16: 768
HEADS = 4                 # vit_b_16: 12
HEAD_DIM = HIDDEN // HEADS
MLP = 128                 # vit_b_16: 3072
LAYERS = 2                # vit_b_16: 12
NUM_CLASSES = 10
HEAD_PAD = 128            # lane-dense padded width of the classification head
LN_EPS = 1e-6             # torchvision ViT LayerNorm eps
NEG_INF = -1e30


def _round_up(v, m):
    return ((v + m - 1) // m) * m


# ------------------------------ in-kernel math -------------------------------
def _layernorm(x, g, b):
    mean = jnp.mean(x, axis=-1, keepdims=True)
    c = x - mean
    var = jnp.mean(c * c, axis=-1, keepdims=True)
    return c * jax.lax.rsqrt(var + LN_EPS) * g + b


def _gelu(x):
    # exact (erf) GELU, matching torch.nn.GELU() default
    return 0.5 * x * (1.0 + jax.lax.erf(x * (1.0 / math.sqrt(2.0))))


# ------------------------------ fused ViT kernel ------------------------------
def _vit_fused_kernel(
    # inputs (resident / per-layer streamed)
    patches_ref, w_patch_ref, conv_b_ref, cls_ref, pos_ref,
    ln1_g_ref, ln1_b_ref, w_qkv_ref, b_qkv_ref, w_out_ref, b_out_ref,
    ln2_g_ref, ln2_b_ref, w_fc1_ref, b_fc1_ref, w_fc2_ref, b_fc2_ref,
    ln_f_g_ref, ln_f_b_ref, head_w_ref, head_b_ref,
    # output
    logits_ref,
    # scratch (persists across grid steps)
    tok_ref, attn_ref,
    # static config
    *, batch, seq, n_patch, seq_pad):

    D = HIDDEN
    layer = pl.program_id(0)
    last = pl.num_programs(0) - 1

    # ------------- prologue (layer 0): patch embed + CLS + pos-emb -----------
    @pl.when(layer == 0)
    def _():
        emb = (jnp.dot(patches_ref[...], w_patch_ref[...],
                       preferred_element_type=jnp.float32)
               + conv_b_ref[...])                           # (batch*n_patch, D)
        pos = pos_ref[...]                                  # (seq, D)
        cls_row = cls_ref[...] + pos[0:1, :]                # (1, D)
        tok_ref[...] = jnp.zeros_like(tok_ref)              # zero padding rows
        for b in range(batch):
            r0 = b * seq_pad
            tok_ref[r0:r0 + 1, :] = cls_row
            tok_ref[r0 + 1:r0 + seq, :] = (
                emb[b * n_patch:(b + 1) * n_patch, :] + pos[1:seq, :])
        logits_ref[...] = jnp.zeros_like(logits_ref)

    # ----------------------- transformer encoder layer -----------------------
    x = tok_ref[...]                                         # (batch*seq_pad, D)

    # -- attention block: x = x + out_proj(MHA(LN1(x))) --
    y = _layernorm(x, ln1_g_ref[0], ln1_b_ref[0])
    qkv = (jnp.dot(y, w_qkv_ref[0], preferred_element_type=jnp.float32)
           + b_qkv_ref[0])                                   # (batch*seq_pad, 3D)

    w_out = w_out_ref[0]                                     # (D, D)
    scale = 1.0 / math.sqrt(HEAD_DIM)
    # mask padded key positions (cols >= seq) within each batch chunk
    key_mask = (jax.lax.broadcasted_iota(jnp.int32, (seq_pad, seq_pad), 1)
                < seq)

    for b in range(batch):
        r0 = b * seq_pad
        rows = slice(r0, r0 + seq_pad)
        acc = None
        for h in range(HEADS):
            c0 = h * HEAD_DIM
            q = qkv[rows, c0:c0 + HEAD_DIM]
            k = qkv[rows, D + c0:D + c0 + HEAD_DIM]
            v = qkv[rows, 2 * D + c0:2 * D + c0 + HEAD_DIM]
            s = jax.lax.dot_general(q, k, (((1,), (1,)), ((), ())),
                                    preferred_element_type=jnp.float32) * scale
            s = jnp.where(key_mask, s, NEG_INF)
            s = s - jnp.max(s, axis=-1, keepdims=True)
            p = jnp.exp(s)
            p = p * pl.reciprocal(jnp.sum(p, axis=-1, keepdims=True),
                                  approx=True)
            hout = jnp.dot(p, v, preferred_element_type=jnp.float32)
            # fold per-head out_proj directly (== concat(heads) @ w_out)
            contrib = jnp.dot(hout, w_out[c0:c0 + HEAD_DIM, :],
                              preferred_element_type=jnp.float32)
            acc = contrib if acc is None else acc + contrib
        attn_ref[r0:r0 + seq_pad, :] = acc

    x = x + attn_ref[...] + b_out_ref[0]

    # -- MLP block: x = x + fc2(GELU(fc1(LN2(x)))) --
    z = _layernorm(x, ln2_g_ref[0], ln2_b_ref[0])
    h1 = _gelu(jnp.dot(z, w_fc1_ref[0], preferred_element_type=jnp.float32)
               + b_fc1_ref[0])
    x = x + (jnp.dot(h1, w_fc2_ref[0], preferred_element_type=jnp.float32)
             + b_fc2_ref[0])

    tok_ref[...] = x

    # ------------- epilogue (last layer): final LN + linear head -------------
    @pl.when(layer == last)
    def _():
        xf = _layernorm(x, ln_f_g_ref[...], ln_f_b_ref[...])
        # lane-dense padded head: (batch*seq_pad, HEAD_PAD)
        logits_all = (jnp.dot(xf, head_w_ref[...],
                              preferred_element_type=jnp.float32)
                      + head_b_ref[...])
        for b in range(batch):
            logits_ref[b:b + 1, :] = logits_all[b * seq_pad:b * seq_pad + 1, :]


# ------------------------------ spec helpers ---------------------------------
def _resident_spec(shape):
    nd = len(shape)
    return pl.BlockSpec(tuple(shape), lambda l, _n=nd: (0,) * _n)


def _per_layer_spec(shape):
    nd = len(shape)
    return pl.BlockSpec((1,) + tuple(shape[1:]),
                        lambda l, _n=nd: (l,) + (0,) * (_n - 1))


# --------------------------------- parameters --------------------------------
def init_params(key):
    D, P, C = HIDDEN, PATCH, CHANNELS
    S = (IMG // P) ** 2 + 1
    keys = iter(jax.random.split(key, 16))

    def nrm(shape, scale=0.02):
        return scale * jax.random.normal(next(keys), shape, jnp.float32)

    head_w = nrm((D, NUM_CLASSES))
    head_w = jnp.pad(head_w, ((0, 0), (0, HEAD_PAD - NUM_CLASSES)))

    return {
        # conv_proj (Conv2d(C, D, kernel=P, stride=P)) stored pre-flattened as
        # (C*P*P, D) so the patch embedding is a plain matmul.
        "w_patch": nrm((C * P * P, D)),
        "conv_b": nrm((1, D)),
        "class_token": nrm((1, D)),
        "pos_emb": nrm((S, D)),
        "ln_f_g": jnp.ones((1, D), jnp.float32),
        "ln_f_b": jnp.zeros((1, D), jnp.float32),
        # replaced head Linear(D, NUM_CLASSES), zero-padded to 128 lanes
        "head_w": head_w,
        "head_b": jnp.zeros((1, HEAD_PAD), jnp.float32),
        # per-layer weights stacked on a leading LAYERS axis so one fused
        # pallas_call streams them with grid=(LAYERS,)
        "ln1_g": jnp.ones((LAYERS, 1, D), jnp.float32),
        "ln1_b": jnp.zeros((LAYERS, 1, D), jnp.float32),
        "w_qkv": nrm((LAYERS, D, 3 * D)),      # in_proj_weight.T, [q|k|v] cols
        "b_qkv": nrm((LAYERS, 1, 3 * D)),
        "w_out": nrm((LAYERS, D, D)),          # out_proj.weight.T
        "b_out": nrm((LAYERS, 1, D)),
        "ln2_g": jnp.ones((LAYERS, 1, D), jnp.float32),
        "ln2_b": jnp.zeros((LAYERS, 1, D), jnp.float32),
        "w_fc1": nrm((LAYERS, D, MLP)),
        "b_fc1": nrm((LAYERS, 1, MLP)),
        "w_fc2": nrm((LAYERS, MLP, D)),
        "b_fc2": nrm((LAYERS, 1, D)),
    }


# ---------------------------------- forward ----------------------------------
def vit_forward(params, x):
    # x: NCHW float32, (B, 3, IMG, IMG)
    B, C, H, W = x.shape
    gh, gw = H // PATCH, W // PATCH
    n_patch = gh * gw
    seq = n_patch + 1
    seq_pad = _round_up(seq, 8)      # sublane-pad each batch's token chunk
    m_pad = B * seq_pad
    D = HIDDEN

    # Conv2d(kernel=stride=PATCH) == patch extraction + matmul; this
    # reshape/transpose is pure layout plumbing done once in the wrapper.
    patches = x.astype(jnp.float32).reshape(B, C, gh, PATCH, gw, PATCH)
    patches = patches.transpose(0, 2, 4, 1, 3, 5)            # (B,gh,gw,C,P,P)
    patches = patches.reshape(B * n_patch, C * PATCH * PATCH)

    tagged = [
        (patches, False),
        (params["w_patch"], False), (params["conv_b"], False),
        (params["class_token"], False), (params["pos_emb"], False),
        (params["ln1_g"], True), (params["ln1_b"], True),
        (params["w_qkv"], True), (params["b_qkv"], True),
        (params["w_out"], True), (params["b_out"], True),
        (params["ln2_g"], True), (params["ln2_b"], True),
        (params["w_fc1"], True), (params["b_fc1"], True),
        (params["w_fc2"], True), (params["b_fc2"], True),
        (params["ln_f_g"], False), (params["ln_f_b"], False),
        (params["head_w"], False), (params["head_b"], False),
    ]
    inputs = tuple(a for a, _ in tagged)
    in_specs = [(_per_layer_spec(a.shape) if is_layer else _resident_spec(a.shape))
                for a, is_layer in tagged]

    kernel = functools.partial(
        _vit_fused_kernel, batch=B, seq=seq, n_patch=n_patch, seq_pad=seq_pad)

    logits_pad = pl.pallas_call(
        kernel,
        out_shape=jax.ShapeDtypeStruct((B, HEAD_PAD), jnp.float32),
        grid=(LAYERS,),
        in_specs=in_specs,
        out_specs=_resident_spec((B, HEAD_PAD)),
        scratch_shapes=[pltpu.VMEM((m_pad, D), jnp.float32),   # resident tokens
                        pltpu.VMEM((m_pad, D), jnp.float32)],  # attention out
        compiler_params=pltpu.CompilerParams(
            dimension_semantics=("arbitrary",)),
    )(*inputs)

    return logits_pad[:, :NUM_CLASSES]


if __name__ == "__main__":
    key = jax.random.PRNGKey(0)
    pkey, xkey = jax.random.split(key)
    params = init_params(pkey)
    x = jax.random.normal(xkey, (2, CHANNELS, IMG, IMG), jnp.float32)

    fwd = jax.jit(vit_forward)
    logits = fwd(params, x)
    jax.block_until_ready(logits)

    assert logits.shape == (2, NUM_CLASSES), logits.shape
    assert logits.dtype == jnp.float32
    assert bool(jnp.all(jnp.isfinite(logits)))
    print("KERNEL_OK")
</pallas_src>

<mosaic_0001>
module attributes {stable_mosaic.version = 11 : i64} {
  func.func @_vit_fused_kernel(%arg0: i32, %arg1: memref<8x768xf32, #tpu.memory_space<vmem>>, %arg2: memref<768x64xf32, #tpu.memory_space<vmem>>, %arg3: memref<1x64xf32, #tpu.memory_space<vmem>>, %arg4: memref<1x64xf32, #tpu.memory_space<vmem>>, %arg5: memref<5x64xf32, #tpu.memory_space<vmem>>, %arg6: memref<1x1x64xf32, #tpu.memory_space<vmem>>, %arg7: memref<1x1x64xf32, #tpu.memory_space<vmem>>, %arg8: memref<1x64x192xf32, #tpu.memory_space<vmem>>, %arg9: memref<1x1x192xf32, #tpu.memory_space<vmem>>, %arg10: memref<1x64x64xf32, #tpu.memory_space<vmem>>, %arg11: memref<1x1x64xf32, #tpu.memory_space<vmem>>, %arg12: memref<1x1x64xf32, #tpu.memory_space<vmem>>, %arg13: memref<1x1x64xf32, #tpu.memory_space<vmem>>, %arg14: memref<1x64x128xf32, #tpu.memory_space<vmem>>, %arg15: memref<1x1x128xf32, #tpu.memory_space<vmem>>, %arg16: memref<1x128x64xf32, #tpu.memory_space<vmem>>, %arg17: memref<1x1x64xf32, #tpu.memory_space<vmem>>, %arg18: memref<1x64xf32, #tpu.memory_space<vmem>>, %arg19: memref<1x64xf32, #tpu.memory_space<vmem>>, %arg20: memref<64x128xf32, #tpu.memory_space<vmem>>, %arg21: memref<1x128xf32, #tpu.memory_space<vmem>>, %arg22: memref<2x128xf32, #tpu.memory_space<vmem>>, %arg23: memref<16x64xf32, #tpu.memory_space<vmem>>, %arg24: memref<16x64xf32, #tpu.memory_space<vmem>>) attributes {dimension_semantics = [#tpu.dimension_semantics<arbitrary>], iteration_bounds = array<i64: 2>, scalar_prefetch = 0 : i64, scratch_operands = 2 : i64, tpu.core_type = #tpu.core_type<tc>, window_params = [{pipeline_mode = #tpu.pipeline_mode<synchronous>, transform_indices = @transform_0, window_bounds = array<i64: 8, 768>}, {pipeline_mode = #tpu.pipeline_mode<synchronous>, transform_indices = @transform_1, window_bounds = array<i64: 768, 64>}, {pipeline_mode = #tpu.pipeline_mode<synchronous>, transform_indices = @transform_2, window_bounds = array<i64: 1, 64>}, {pipeline_mode = #tpu.pipeline_mode<synchronous>, transform_indices = @transform_3, window_bounds = array<i64: 1, 64>}, {pipeline_mode = #tpu.pipeline_mode<synchronous>, transform_indices = @transform_4, window_bounds = array<i64: 5, 64>}, {transform_indices = @transform_5, window_bounds = array<i64: 1, 1, 64>}, {transform_indices = @transform_6, window_bounds = array<i64: 1, 1, 64>}, {transform_indices = @transform_7, window_bounds = array<i64: 1, 64, 192>}, {transform_indices = @transform_8, window_bounds = array<i64: 1, 1, 192>}, {transform_indices = @transform_9, window_bounds = array<i64: 1, 64, 64>}, {transform_indices = @transform_10, window_bounds = array<i64: 1, 1, 64>}, {transform_indices = @transform_11, window_bounds = array<i64: 1, 1, 64>}, {transform_indices = @transform_12, window_bounds = array<i64: 1, 1, 64>}, {transform_indices = @transform_13, window_bounds = array<i64: 1, 64, 128>}, {transform_indices = @transform_14, window_bounds = array<i64: 1, 1, 128>}, {transform_indices = @transform_15, window_bounds = array<i64: 1, 128, 64>}, {transform_indices = @transform_16, window_bounds = array<i64: 1, 1, 64>}, {pipeline_mode = #tpu.pipeline_mode<synchronous>, transform_indices = @transform_17, window_bounds = array<i64: 1, 64>}, {pipeline_mode = #tpu.pipeline_mode<synchronous>, transform_indices = @transform_18, window_bounds = array<i64: 1, 64>}, {pipeline_mode = #tpu.pipeline_mode<synchronous>, transform_indices = @transform_19, window_bounds = array<i64: 64, 128>}, {pipeline_mode = #tpu.pipeline_mode<synchronous>, transform_indices = @transform_20, window_bounds = array<i64: 1, 128>}, {pipeline_mode = #tpu.pipeline_mode<synchronous>, transform_indices = @transform_21, window_bounds = array<i64: 2, 128>}]} {
    %c0_i32 = arith.constant 0 : i32
    %0 = arith.cmpi eq, %arg0, %c0_i32 : i32
    %1 = arith.extui %0 : i1 to i32
    %c0_i32_0 = arith.constant 0 : i32
    %2 = arith.cmpi ne, %1, %c0_i32_0 : i32
    scf.if %2 {
      %c0_117 = arith.constant 0 : index
      %c0_118 = arith.constant 0 : index
      %273 = vector.load %arg1[%c0_117, %c0_118] : memref<8x768xf32, #tpu.memory_space<vmem>>, vector<8x768xf32>
      %c0_119 = arith.constant 0 : index
      %c0_120 = arith.constant 0 : index
      %274 = vector.load %arg2[%c0_119, %c0_120] : memref<768x64xf32, #tpu.memory_space<vmem>>, vector<768x64xf32>
      %cst_121 = arith.constant dense<0.000000e+00> : vector<8x64xf32>
      %275 = tpu.matmul %273, %274, %cst_121 {dimension_numbers = #tpu.dot_dimension_numbers<[1], [0], [0], [1], [0, 0, 1, 1], [], []>} : vector<8x768xf32>, vector<768x64xf32>, vector<8x64xf32> -> vector<8x64xf32>
      %c0_122 = arith.constant 0 : index
      %c0_123 = arith.constant 0 : index
      %276 = vector.load %arg3[%c0_122, %c0_123] : memref<1x64xf32, #tpu.memory_space<vmem>>, vector<1x64xf32>
      %277 = vector.broadcast %276 : vector<1x64xf32> to vector<8x64xf32>
      %278 = arith.addf %275, %277 : vector<8x64xf32>
      %c0_124 = arith.constant 0 : index
      %c0_125 = arith.constant 0 : index
      %279 = vector.load %arg5[%c0_124, %c0_125] : memref<5x64xf32, #tpu.memory_space<vmem>>, vector<5x64xf32>
      %c0_126 = arith.constant 0 : index
      %c0_127 = arith.constant 0 : index
      %280 = vector.load %arg4[%c0_126, %c0_127] : memref<1x64xf32, #tpu.memory_space<vmem>>, vector<1x64xf32>
      %281 = vector.extract_strided_slice %279 {offsets = [0, 0], sizes = [1, 64], strides = [1, 1]} : vector<5x64xf32> to vector<1x64xf32>
      %282 = arith.addf %280, %281 : vector<1x64xf32>
      %cst_128 = arith.constant 0.000000e+00 : f32
      %283 = vector.broadcast %cst_128 : f32 to vector<16x64xf32>
      %c0_129 = arith.constant 0 : index
      %c0_130 = arith.constant 0 : index
      %284 = vector.load %arg23[%c0_129, %c0_130] : memref<16x64xf32, #tpu.memory_space<vmem>>, vector<16x64xf32>
      tpu.vector_store %arg23[%c0_129, %c0_130], %283 {strides = array<i32>} : memref<16x64xf32, #tpu.memory_space<vmem>>, vector<16x64xf32>,
      %c0_131 = arith.constant 0 : index
      %c0_132 = arith.constant 0 : index
      %285 = vector.load %arg23[%c0_131, %c0_132] : memref<16x64xf32, #tpu.memory_space<vmem>>, vector<1x64xf32>
      tpu.vector_store %arg23[%c0_131, %c0_132], %282 {strides = array<i32>} : memref<16x64xf32, #tpu.memory_space<vmem>>, vector<1x64xf32>,
      %286 = vector.extract_strided_slice %278 {offsets = [0, 0], sizes = [4, 64], strides = [1, 1]} : vector<8x64xf32> to vector<4x64xf32>
      %287 = vector.extract_strided_slice %279 {offsets = [1, 0], sizes = [4, 64], strides = [1, 1]} : vector<5x64xf32> to vector<4x64xf32>
      %288 = arith.addf %286, %287 : vector<4x64xf32>
      %c1 = arith.constant 1 : index
      %c0_133 = arith.constant 0 : index
      %289 = vector.load %arg23[%c1, %c0_133] : memref<16x64xf32, #tpu.memory_space<vmem>>, vector<4x64xf32>
      tpu.vector_store %arg23[%c1, %c0_133], %288 {strides = array<i32>} : memref<16x64xf32, #tpu.memory_space<vmem>>, vector<4x64xf32>,
      %c8_134 = arith.constant 8 : index
      %c0_135 = arith.constant 0 : index
      %290 = vector.load %arg23[%c8_134, %c0_135] : memref<16x64xf32, #tpu.memory_space<vmem>>, vector<1x64xf32>
      tpu.vector_store %arg23[%c8_134, %c0_135], %282 {strides = array<i32>} : memref<16x64xf32, #tpu.memory_space<vmem>>, vector<1x64xf32>,
      %291 = vector.extract_strided_slice %278 {offsets = [4, 0], sizes = [4, 64], strides = [1, 1]} : vector<8x64xf32> to vector<4x64xf32>
      %292 = vector.extract_strided_slice %279 {offsets = [1, 0], sizes = [4, 64], strides = [1, 1]} : vector<5x64xf32> to vector<4x64xf32>
      %293 = arith.addf %291, %292 : vector<4x64xf32>
      %c9 = arith.constant 9 : index
      %c0_136 = arith.constant 0 : index
      %294 = vector.load %arg23[%c9, %c0_136] : memref<16x64xf32, #tpu.memory_space<vmem>>, vector<4x64xf32>
      tpu.vector_store %arg23[%c9, %c0_136], %293 {strides = array<i32>} : memref<16x64xf32, #tpu.memory_space<vmem>>, vector<4x64xf32>,
      %cst_137 = arith.constant 0.000000e+00 : f32
      %295 = vector.broadcast %cst_137 : f32 to vector<2x128xf32>
      %c0_138 = arith.constant 0 : index
      %c0_139 = arith.constant 0 : index
      %296 = vector.load %arg22[%c0_138, %c0_139] : memref<2x128xf32, #tpu.memory_space<vmem>>, vector<2x128xf32>
      tpu.vector_store %arg22[%c0_138, %c0_139], %295 {strides = array<i32>} : memref<2x128xf32, #tpu.memory_space<vmem>>, vector<2x128xf32>,
    } else {
    }
    %c0 = arith.constant 0 : index
    %c0_1 = arith.constant 0 : index
    %3 = vector.load %arg23[%c0, %c0_1] : memref<16x64xf32, #tpu.memory_space<vmem>>, vector<16x64xf32>
    %c0_2 = arith.constant 0 : index
    %c0_3 = arith.constant 0 : index
    %c0_4 = arith.constant 0 : index
    %4 = vector.load %arg6[%c0_2, %c0_3, %c0_4] : memref<1x1x64xf32, #tpu.memory_space<vmem>>, vector<1x1x64xf32>
    %5 = vector.shape_cast %4 : vector<1x1x64xf32> to vector<1x64xf32>
    %c0_5 = arith.constant 0 : index
    %c0_6 = arith.constant 0 : index
    %c0_7 = arith.constant 0 : index
    %6 = vector.load %arg7[%c0_5, %c0_6, %c0_7] : memref<1x1x64xf32, #tpu.memory_space<vmem>>, vector<1x1x64xf32>
    %7 = vector.shape_cast %6 : vector<1x1x64xf32> to vector<1x64xf32>
    %cst = arith.constant dense<0.000000e+00> : vector<16xf32>
    %8 = vector.multi_reduction <add>, %3, %cst [1] : vector<16x64xf32> to vector<16xf32>
    %9 = vector.shape_cast %8 : vector<16xf32> to vector<16x1xf32>
    %cst_8 = arith.constant 6.400000e+01 : f32
    %10 = vector.broadcast %cst_8 : f32 to vector<16x1xf32>
    %11 = arith.divf %9, %10 : vector<16x1xf32>
    %12 = vector.broadcast %11 : vector<16x1xf32> to vector<16x64xf32>
    %13 = arith.subf %3, %12 : vector<16x64xf32>
    %14 = arith.mulf %13, %13 : vector<16x64xf32>
    %cst_9 = arith.constant dense<0.000000e+00> : vector<16xf32>
    %15 = vector.multi_reduction <add>, %14, %cst_9 [1] : vector<16x64xf32> to vector<16xf32>
    %16 = vector.shape_cast %15 : vector<16xf32> to vector<16x1xf32>
    %cst_10 = arith.constant 6.400000e+01 : f32
    %17 = vector.broadcast %cst_10 : f32 to vector<16x1xf32>
    %18 = arith.divf %16, %17 : vector<16x1xf32>
    %cst_11 = arith.constant 9.99999997E-7 : f32
    %19 = vector.broadcast %cst_11 : f32 to vector<16x1xf32>
    %20 = arith.addf %18, %19 : vector<16x1xf32>
    %21 = math.rsqrt %20 : vector<16x1xf32>
    %22 = vector.broadcast %21 : vector<16x1xf32> to vector<16x64xf32>
    %23 = arith.mulf %13, %22 : vector<16x64xf32>
    %24 = vector.broadcast %5 : vector<1x64xf32> to vector<16x64xf32>
    %25 = arith.mulf %23, %24 : vector<16x64xf32>
    %26 = vector.broadcast %7 : vector<1x64xf32> to vector<16x64xf32>
    %27 = arith.addf %25, %26 : vector<16x64xf32>
    %c0_12 = arith.constant 0 : index
    %c0_13 = arith.constant 0 : index
    %c0_14 = arith.constant 0 : index
    %28 = vector.load %arg8[%c0_12, %c0_13, %c0_14] : memref<1x64x192xf32, #tpu.memory_space<vmem>>, vector<1x64x192xf32>
    %29 = vector.shape_cast %28 : vector<1x64x192xf32> to vector<64x192xf32>
    %cst_15 = arith.constant dense<0.000000e+00> : vector<16x192xf32>
    %30 = tpu.matmul %27, %29, %cst_15 {dimension_numbers = #tpu.dot_dimension_numbers<[1], [0], [0], [1], [0, 0, 1, 1], [], []>} : vector<16x64xf32>, vector<64x192xf32>, vector<16x192xf32> -> vector<16x192xf32>
    %c0_16 = arith.constant 0 : index
    %c0_17 = arith.constant 0 : index
    %c0_18 = arith.constant 0 : index
    %31 = vector.load %arg9[%c0_16, %c0_17, %c0_18] : memref<1x1x192xf32, #tpu.memory_space<vmem>>, vector<1x1x192xf32>
    %32 = vector.shape_cast %31 : vector<1x1x192xf32> to vector<1x192xf32>
    %33 = vector.broadcast %32 : vector<1x192xf32> to vector<16x192xf32>
    %34 = arith.addf %30, %33 : vector<16x192xf32>
    %c0_19 = arith.constant 0 : index
    %c0_20 = arith.constant 0 : index
    %c0_21 = arith.constant 0 : index
    %35 = vector.load %arg10[%c0_19, %c0_20, %c0_21] : memref<1x64x64xf32, #tpu.memory_space<vmem>>, vector<1x64x64xf32>
    %36 = vector.shape_cast %35 : vector<1x64x64xf32> to vector<64x64xf32>
    %37 = tpu.iota {dimensions = array<i32: 1>} : vector<8x8xi32>
    %c5_i32 = arith.constant 5 : i32
    %38 = vector.broadcast %c5_i32 : i32 to vector<8x8xi32>
    %39 = arith.cmpi slt, %37, %38 : vector<8x8xi32>
    %40 = vector.extract_strided_slice %34 {offsets = [0, 0], sizes = [8, 16], strides = [1, 1]} : vector<16x192xf32> to vector<8x16xf32>
    %41 = vector.extract_strided_slice %34 {offsets = [0, 64], sizes = [8, 16], strides = [1, 1]} : vector<16x192xf32> to vector<8x16xf32>
    %42 = vector.extract_strided_slice %34 {offsets = [0, 128], sizes = [8, 16], strides = [1, 1]} : vector<16x192xf32> to vector<8x16xf32>
    %cst_22 = arith.constant dense<0.000000e+00> : vector<8x8xf32>
    %43 = tpu.matmul %40, %41, %cst_22 {dimension_numbers = #tpu.dot_dimension_numbers<[1], [1], [0], [0], [0, 0, 1, 0], [], []>} : vector<8x16xf32>, vector<8x16xf32>, vector<8x8xf32> -> vector<8x8xf32>
    %cst_23 = arith.constant 2.500000e-01 : f32
    %44 = vector.broadcast %cst_23 : f32 to vector<8x8xf32>
    %45 = arith.mulf %43, %44 : vector<8x8xf32>
    %cst_24 = arith.constant -1.000000e+30 : f32
    %46 = vector.broadcast %cst_24 : f32 to vector<8x8xf32>
    %47 = arith.select %39, %45, %46 : vector<8x8xi1>, vector<8x8xf32>
    %cst_25 = arith.constant dense<0xFF800000> : vector<8xf32>
    %48 = vector.multi_reduction <maximumf>, %47, %cst_25 [1] : vector<8x8xf32> to vector<8xf32>
    %49 = vector.shape_cast %48 : vector<8xf32> to vector<8x1xf32>
    %50 = vector.broadcast %49 : vector<8x1xf32> to vector<8x8xf32>
    %51 = arith.subf %47, %50 : vector<8x8xf32>
    %52 = math.exp %51 : vector<8x8xf32>
    %cst_26 = arith.constant dense<0.000000e+00> : vector<8xf32>
    %53 = vector.multi_reduction <add>, %52, %cst_26 [1] : vector<8x8xf32> to vector<8xf32>
    %54 = vector.shape_cast %53 : vector<8xf32> to vector<8x1xf32>
    %55 = tpu.reciprocal %54 {approx = true} : vector<8x1xf32> -> vector<8x1xf32>
    %56 = vector.broadcast %55 : vector<8x1xf32> to vector<8x8xf32>
    %57 = arith.mulf %52, %56 : vector<8x8xf32>
    %cst_27 = arith.constant dense<0.000000e+00> : vector<8x16xf32>
    %58 = tpu.matmul %57, %42, %cst_27 {dimension_numbers = #tpu.dot_dimension_numbers<[1], [0], [0], [1], [0, 0, 1, 1], [], []>} : vector<8x8xf32>, vector<8x16xf32>, vector<8x16xf32> -> vector<8x16xf32>
    %59 = vector.extract_strided_slice %36 {offsets = [0, 0], sizes = [16, 64], strides = [1, 1]} : vector<64x64xf32> to vector<16x64xf32>
    %cst_28 = arith.constant dense<0.000000e+00> : vector<8x64xf32>
    %60 = tpu.matmul %58, %59, %cst_28 {dimension_numbers = #tpu.dot_dimension_numbers<[1], [0], [0], [1], [0, 0, 1, 1], [], []>} : vector<8x16xf32>, vector<16x64xf32>, vector<8x64xf32> -> vector<8x64xf32>
    %61 = vector.extract_strided_slice %34 {offsets = [0, 16], sizes = [8, 16], strides = [1, 1]} : vector<16x192xf32> to vector<8x16xf32>
    %62 = vector.extract_strided_slice %34 {offsets = [0, 80], sizes = [8, 16], strides = [1, 1]} : vector<16x192xf32> to vector<8x16xf32>
    %63 = vector.extract_strided_slice %34 {offsets = [0, 144], sizes = [8, 16], strides = [1, 1]} : vector<16x192xf32> to vector<8x16xf32>
    %cst_29 = arith.constant dense<0.000000e+00> : vector<8x8xf32>
    %64 = tpu.matmul %61, %62, %cst_29 {dimension_numbers = #tpu.dot_dimension_numbers<[1], [1], [0], [0], [0, 0, 1, 0], [], []>} : vector<8x16xf32>, vector<8x16xf32>, vector<8x8xf32> -> vector<8x8xf32>
    %cst_30 = arith.constant 2.500000e-01 : f32
    %65 = vector.broadcast %cst_30 : f32 to vector<8x8xf32>
    %66 = arith.mulf %64, %65 : vector<8x8xf32>
    %cst_31 = arith.constant -1.000000e+30 : f32
    %67 = vector.broadcast %cst_31 : f32 to vector<8x8xf32>
    %68 = arith.select %39, %66, %67 : vector<8x8xi1>, vector<8x8xf32>
    %cst_32 = arith.constant dense<0xFF800000> : vector<8xf32>
    %69 = vector.multi_reduction <maximumf>, %68, %cst_32 [1] : vector<8x8xf32> to vector<8xf32>
    %70 = vector.shape_cast %69 : vector<8xf32> to vector<8x1xf32>
    %71 = vector.broadcast %70 : vector<8x1xf32> to vector<8x8xf32>
    %72 = arith.subf %68, %71 : vector<8x8xf32>
    %73 = math.exp %72 : vector<8x8xf32>
    %cst_33 = arith.constant dense<0.000000e+00> : vector<8xf32>
    %74 = vector.multi_reduction <add>, %73, %cst_33 [1] : vector<8x8xf32> to vector<8xf32>
    %75 = vector.shape_cast %74 : vector<8xf32> to vector<8x1xf32>
    %76 = tpu.reciprocal %75 {approx = true} : vector<8x1xf32> -> vector<8x1xf32>
    %77 = vector.broadcast %76 : vector<8x1xf32> to vector<8x8xf32>
    %78 = arith.mulf %73, %77 : vector<8x8xf32>
    %cst_34 = arith.constant dense<0.000000e+00> : vector<8x16xf32>
    %79 = tpu.matmul %78, %63, %cst_34 {dimension_numbers = #tpu.dot_dimension_numbers<[1], [0], [0], [1], [0, 0, 1, 1], [], []>} : vector<8x8xf32>, vector<8x16xf32>, vector<8x16xf32> -> vector<8x16xf32>
    %80 = vector.extract_strided_slice %36 {offsets = [16, 0], sizes = [16, 64], strides = [1, 1]} : vector<64x64xf32> to vector<16x64xf32>
    %cst_35 = arith.constant dense<0.000000e+00> : vector<8x64xf32>
    %81 = tpu.matmul %79, %80, %cst_35 {dimension_numbers = #tpu.dot_dimension_numbers<[1], [0], [0], [1], [0, 0, 1, 1], [], []>} : vector<8x16xf32>, vector<16x64xf32>, vector<8x64xf32> -> vector<8x64xf32>
    %82 = arith.addf %60, %81 : vector<8x64xf32>
    %83 = vector.extract_strided_slice %34 {offsets = [0, 32], sizes = [8, 16], strides = [1, 1]} : vector<16x192xf32> to vector<8x16xf32>
    %84 = vector.extract_strided_slice %34 {offsets = [0, 96], sizes = [8, 16], strides = [1, 1]} : vector<16x192xf32> to vector<8x16xf32>
    %85 = vector.extract_strided_slice %34 {offsets = [0, 160], sizes = [8, 16], strides = [1, 1]} : vector<16x192xf32> to vector<8x16xf32>
    %cst_36 = arith.constant dense<0.000000e+00> : vector<8x8xf32>
    %86 = tpu.matmul %83, %84, %cst_36 {dimension_numbers = #tpu.dot_dimension_numbers<[1], [1], [0], [0], [0, 0, 1, 0], [], []>} : vector<8x16xf32>, vector<8x16xf32>, vector<8x8xf32> -> vector<8x8xf32>
    %cst_37 = arith.constant 2.500000e-01 : f32
    %87 = vector.broadcast %cst_37 : f32 to vector<8x8xf32>
    %88 = arith.mulf %86, %87 : vector<8x8xf32>
    %cst_38 = arith.constant -1.000000e+30 : f32
    %89 = vector.broadcast %cst_38 : f32 to vector<8x8xf32>
    %90 = arith.select %39, %88, %89 : vector<8x8xi1>, vector<8x8xf32>
    %cst_39 = arith.constant dense<0xFF800000> : vector<8xf32>
    %91 = vector.multi_reduction <maximumf>, %90, %cst_39 [1] : vector<8x8xf32> to vector<8xf32>
    %92 = vector.shape_cast %91 : vector<8xf32> to vector<8x1xf32>
    %93 = vector.broadcast %92 : vector<8x1xf32> to vector<8x8xf32>
    %94 = arith.subf %90, %93 : vector<8x8xf32>
    %95 = math.exp %94 : vector<8x8xf32>
    %cst_40 = arith.constant dense<0.000000e+00> : vector<8xf32>
    %96 = vector.multi_reduction <add>, %95, %cst_40 [1] : vector<8x8xf32> to vector<8xf32>
    %97 = vector.shape_cast %96 : vector<8xf32> to vector<8x1xf32>
    %98 = tpu.reciprocal %97 {approx = true} : vector<8x1xf32> -> vector<8x1xf32>
    %99 = vector.broadcast %98 : vector<8x1xf32> to vector<8x8xf32>
    %100 = arith.mulf %95, %99 : vector<8x8xf32>
    %cst_41 = arith.constant dense<0.000000e+00> : vector<8x16xf32>
    %101 = tpu.matmul %100, %85, %cst_41 {dimension_numbers = #tpu.dot_dimension_numbers<[1], [0], [0], [1], [0, 0, 1, 1], [], []>} : vector<8x8xf32>, vector<8x16xf32>, vector<8x16xf32> -> vector<8x16xf32>
    %102 = vector.extract_strided_slice %36 {offsets = [32, 0], sizes = [16, 64], strides = [1, 1]} : vector<64x64xf32> to vector<16x64xf32>
    %cst_42 = arith.constant dense<0.000000e+00> : vector<8x64xf32>
    %103 = tpu.matmul %101, %102, %cst_42 {dimension_numbers = #tpu.dot_dimension_numbers<[1], [0], [0], [1], [0, 0, 1, 1], [], []>} : vector<8x16xf32>, vector<16x64xf32>, vector<8x64xf32> -> vector<8x64xf32>
    %104 = arith.addf %82, %103 : vector<8x64xf32>
    %105 = vector.extract_strided_slice %34 {offsets = [0, 48], sizes = [8, 16], strides = [1, 1]} : vector<16x192xf32> to vector<8x16xf32>
    %106 = vector.extract_strided_slice %34 {offsets = [0, 112], sizes = [8, 16], strides = [1, 1]} : vector<16x192xf32> to vector<8x16xf32>
    %107 = vector.extract_strided_slice %34 {offsets = [0, 176], sizes = [8, 16], strides = [1, 1]} : vector<16x192xf32> to vector<8x16xf32>
    %cst_43 = arith.constant dense<0.000000e+00> : vector<8x8xf32>
    %108 = tpu.matmul %105, %106, %cst_43 {dimension_numbers = #tpu.dot_dimension_numbers<[1], [1], [0], [0], [0, 0, 1, 0], [], []>} : vector<8x16xf32>, vector<8x16xf32>, vector<8x8xf32> -> vector<8x8xf32>
    %cst_44 = arith.constant 2.500000e-01 : f32
    %109 = vector.broadcast %cst_44 : f32 to vector<8x8xf32>
    %110 = arith.mulf %108, %109 : vector<8x8xf32>
    %cst_45 = arith.constant -1.000000e+30 : f32
    %111 = vector.broadcast %cst_45 : f32 to vector<8x8xf32>
    %112 = arith.select %39, %110, %111 : vector<8x8xi1>, vector<8x8xf32>
    %cst_46 = arith.constant dense<0xFF800000> : vector<8xf32>
    %113 = vector.multi_reduction <maximumf>, %112, %cst_46 [1] : vector<8x8xf32> to vector<8xf32>
    %114 = vector.shape_cast %113 : vector<8xf32> to vector<8x1xf32>
    %115 = vector.broadcast %114 : vector<8x1xf32> to vector<8x8xf32>
    %116 = arith.subf %112, %115 : vector<8x8xf32>
    %117 = math.exp %116 : vector<8x8xf32>
    %cst_47 = arith.constant dense<0.000000e+00> : vector<8xf32>
    %118 = vector.multi_reduction <add>, %117, %cst_47 [1] : vector<8x8xf32> to vector<8xf32>
    %119 = vector.shape_cast %118 : vector<8xf32> to vector<8x1xf32>
    %120 = tpu.reciprocal %119 {approx = true} : vector<8x1xf32> -> vector<8x1xf32>
    %121 = vector.broadcast %120 : vector<8x1xf32> to vector<8x8xf32>
    %122 = arith.mulf %117, %121 : vector<8x8xf32>
    %cst_48 = arith.constant dense<0.000000e+00> : vector<8x16xf32>
    %123 = tpu.matmul %122, %107, %cst_48 {dimension_numbers = #tpu.dot_dimension_numbers<[1], [0], [0], [1], [0, 0, 1, 1], [], []>} : vector<8x8xf32>, vector<8x16xf32>, vector<8x16xf32> -> vector<8x16xf32>
    %124 = vector.extract_strided_slice %36 {offsets = [48, 0], sizes = [16, 64], strides = [1, 1]} : vector<64x64xf32> to vector<16x64xf32>
    %cst_49 = arith.constant dense<0.000000e+00> : vector<8x64xf32>
    %125 = tpu.matmul %123, %124, %cst_49 {dimension_numbers = #tpu.dot_dimension_numbers<[1], [0], [0], [1], [0, 0, 1, 1], [], []>} : vector<8x16xf32>, vector<16x64xf32>, vector<8x64xf32> -> vector<8x64xf32>
    %126 = arith.addf %104, %125 : vector<8x64xf32>
    %c0_50 = arith.constant 0 : index
    %c0_51 = arith.constant 0 : index
    %127 = vector.load %arg24[%c0_50, %c0_51] : memref<16x64xf32, #tpu.memory_space<vmem>>, vector<8x64xf32>
    tpu.vector_store %arg24[%c0_50, %c0_51], %126 {strides = array<i32>} : memref<16x64xf32, #tpu.memory_space<vmem>>, vector<8x64xf32>,
    %128 = vector.extract_strided_slice %34 {offsets = [8, 0], sizes = [8, 16], strides = [1, 1]} : vector<16x192xf32> to vector<8x16xf32>
    %129 = vector.extract_strided_slice %34 {offsets = [8, 64], sizes = [8, 16], strides = [1, 1]} : vector<16x192xf32> to vector<8x16xf32>
    %130 = vector.extract_strided_slice %34 {offsets = [8, 128], sizes = [8, 16], strides = [1, 1]} : vector<16x192xf32> to vector<8x16xf32>
    %cst_52 = arith.constant dense<0.000000e+00> : vector<8x8xf32>
    %131 = tpu.matmul %128, %129, %cst_52 {dimension_numbers = #tpu.dot_dimension_numbers<[1], [1], [0], [0], [0, 0, 1, 0], [], []>} : vector<8x16xf32>, vector<8x16xf32>, vector<8x8xf32> -> vector<8x8xf32>
    %cst_53 = arith.constant 2.500000e-01 : f32
    %132 = vector.broadcast %cst_53 : f32 to vector<8x8xf32>
    %133 = arith.mulf %131, %132 : vector<8x8xf32>
    %cst_54 = arith.constant -1.000000e+30 : f32
    %134 = vector.broadcast %cst_54 : f32 to vector<8x8xf32>
    %135 = arith.select %39, %133, %134 : vector<8x8xi1>, vector<8x8xf32>
    %cst_55 = arith.constant dense<0xFF800000> : vector<8xf32>
    %136 = vector.multi_reduction <maximumf>, %135, %cst_55 [1] : vector<8x8xf32> to vector<8xf32>
    %137 = vector.shape_cast %136 : vector<8xf32> to vector<8x1xf32>
    %138 = vector.broadcast %137 : vector<8x1xf32> to vector<8x8xf32>
    %139 = arith.subf %135, %138 : vector<8x8xf32>
    %140 = math.exp %139 : vector<8x8xf32>
    %cst_56 = arith.constant dense<0.000000e+00> : vector<8xf32>
    %141 = vector.multi_reduction <add>, %140, %cst_56 [1] : vector<8x8xf32> to vector<8xf32>
    %142 = vector.shape_cast %141 : vector<8xf32> to vector<8x1xf32>
    %143 = tpu.reciprocal %142 {approx = true} : vector<8x1xf32> -> vector<8x1xf32>
    %144 = vector.broadcast %143 : vector<8x1xf32> to vector<8x8xf32>
    %145 = arith.mulf %140, %144 : vector<8x8xf32>
    %cst_57 = arith.constant dense<0.000000e+00> : vector<8x16xf32>
    %146 = tpu.matmul %145, %130, %cst_57 {dimension_numbers = #tpu.dot_dimension_numbers<[1], [0], [0], [1], [0, 0, 1, 1], [], []>} : vector<8x8xf32>, vector<8x16xf32>, vector<8x16xf32> -> vector<8x16xf32>
    %147 = vector.extract_strided_slice %36 {offsets = [0, 0], sizes = [16, 64], strides = [1, 1]} : vector<64x64xf32> to vector<16x64xf32>
    %cst_58 = arith.constant dense<0.000000e+00> : vector<8x64xf32>
    %148 = tpu.matmul %146, %147, %cst_58 {dimension_numbers = #tpu.dot_dimension_numbers<[1], [0], [0], [1], [0, 0, 1, 1], [], []>} : vector<8x16xf32>, vector<16x64xf32>, vector<8x64xf32> -> vector<8x64xf32>
    %149 = vector.extract_strided_slice %34 {offsets = [8, 16], sizes = [8, 16], strides = [1, 1]} : vector<16x192xf32> to vector<8x16xf32>
    %150 = vector.extract_strided_slice %34 {offsets = [8, 80], sizes = [8, 16], strides = [1, 1]} : vector<16x192xf32> to vector<8x16xf32>
    %151 = vector.extract_strided_slice %34 {offsets = [8, 144], sizes = [8, 16], strides = [1, 1]} : vector<16x192xf32> to vector<8x16xf32>
    %cst_59 = arith.constant dense<0.000000e+00> : vector<8x8xf32>
    %152 = tpu.matmul %149, %150, %cst_59 {dimension_numbers = #tpu.dot_dimension_numbers<[1], [1], [0], [0], [0, 0, 1, 0], [], []>} : vector<8x16xf32>, vector<8x16xf32>, vector<8x8xf32> -> vector<8x8xf32>
    %cst_60 = arith.constant 2.500000e-01 : f32
    %153 = vector.broadcast %cst_60 : f32 to vector<8x8xf32>
    %154 = arith.mulf %152, %153 : vector<8x8xf32>
    %cst_61 = arith.constant -1.000000e+30 : f32
    %155 = vector.broadcast %cst_61 : f32 to vector<8x8xf32>
    %156 = arith.select %39, %154, %155 : vector<8x8xi1>, vector<8x8xf32>
    %cst_62 = arith.constant dense<0xFF800000> : vector<8xf32>
    %157 = vector.multi_reduction <maximumf>, %156, %cst_62 [1] : vector<8x8xf32> to vector<8xf32>
    %158 = vector.shape_cast %157 : vector<8xf32> to vector<8x1xf32>
    %159 = vector.broadcast %158 : vector<8x1xf32> to vector<8x8xf32>
    %160 = arith.subf %156, %159 : vector<8x8xf32>
    %161 = math.exp %160 : vector<8x8xf32>
    %cst_63 = arith.constant dense<0.000000e+00> : vector<8xf32>
    %162 = vector.multi_reduction <add>, %161, %cst_63 [1] : vector<8x8xf32> to vector<8xf32>
    %163 = vector.shape_cast %162 : vector<8xf32> to vector<8x1xf32>
    %164 = tpu.reciprocal %163 {approx = true} : vector<8x1xf32> -> vector<8x1xf32>
    %165 = vector.broadcast %164 : vector<8x1xf32> to vector<8x8xf32>
    %166 = arith.mulf %161, %165 : vector<8x8xf32>
    %cst_64 = arith.constant dense<0.000000e+00> : vector<8x16xf32>
    %167 = tpu.matmul %166, %151, %cst_64 {dimension_numbers = #tpu.dot_dimension_numbers<[1], [0], [0], [1], [0, 0, 1, 1], [], []>} : vector<8x8xf32>, vector<8x16xf32>, vector<8x16xf32> -> vector<8x16xf32>
    %168 = vector.extract_strided_slice %36 {offsets = [16, 0], sizes = [16, 64], strides = [1, 1]} : vector<64x64xf32> to vector<16x64xf32>
    %cst_65 = arith.constant dense<0.000000e+00> : vector<8x64xf32>
    %169 = tpu.matmul %167, %168, %cst_65 {dimension_numbers = #tpu.dot_dimension_numbers<[1], [0], [0], [1], [0, 0, 1, 1], [], []>} : vector<8x16xf32>, vector<16x64xf32>, vector<8x64xf32> -> vector<8x64xf32>
    %170 = arith.addf %148, %169 : vector<8x64xf32>
    %171 = vector.extract_strided_slice %34 {offsets = [8, 32], sizes = [8, 16], strides = [1, 1]} : vector<16x192xf32> to vector<8x16xf32>
    %172 = vector.extract_strided_slice %34 {offsets = [8, 96], sizes = [8, 16], strides = [1, 1]} : vector<16x192xf32> to vector<8x16xf32>
    %173 = vector.extract_strided_slice %34 {offsets = [8, 160], sizes = [8, 16], strides = [1, 1]} : vector<16x192xf32> to vector<8x16xf32>
    %cst_66 = arith.constant dense<0.000000e+00> : vector<8x8xf32>
    %174 = tpu.matmul %171, %172, %cst_66 {dimension_numbers = #tpu.dot_dimension_numbers<[1], [1], [0], [0], [0, 0, 1, 0], [], []>} : vector<8x16xf32>, vector<8x16xf32>, vector<8x8xf32> -> vector<8x8xf32>
    %cst_67 = arith.constant 2.500000e-01 : f32
    %175 = vector.broadcast %cst_67 : f32 to vector<8x8xf32>
    %176 = arith.mulf %174, %175 : vector<8x8xf32>
    %cst_68 = arith.constant -1.000000e+30 : f32
    %177 = vector.broadcast %cst_68 : f32 to vector<8x8xf32>
    %178 = arith.select %39, %176, %177 : vector<8x8xi1>, vector<8x8xf32>
    %cst_69 = arith.constant dense<0xFF800000> : vector<8xf32>
    %179 = vector.multi_reduction <maximumf>, %178, %cst_69 [1] : vector<8x8xf32> to vector<8xf32>
    %180 = vector.shape_cast %179 : vector<8xf32> to vector<8x1xf32>
    %181 = vector.broadcast %180 : vector<8x1xf32> to vector<8x8xf32>
    %182 = arith.subf %178, %181 : vector<8x8xf32>
    %183 = math.exp %182 : vector<8x8xf32>
    %cst_70 = arith.constant dense<0.000000e+00> : vector<8xf32>
    %184 = vector.multi_reduction <add>, %183, %cst_70 [1] : vector<8x8xf32> to vector<8xf32>
    %185 = vector.shape_cast %184 : vector<8xf32> to vector<8x1xf32>
    %186 = tpu.reciprocal %185 {approx = true} : vector<8x1xf32> -> vector<8x1xf32>
    %187 = vector.broadcast %186 : vector<8x1xf32> to vector<8x8xf32>
    %188 = arith.mulf %183, %187 : vector<8x8xf32>
    %cst_71 = arith.constant dense<0.000000e+00> : vector<8x16xf32>
    %189 = tpu.matmul %188, %173, %cst_71 {dimension_numbers = #tpu.dot_dimension_numbers<[1], [0], [0], [1], [0, 0, 1, 1], [], []>} : vector<8x8xf32>, vector<8x16xf32>, vector<8x16xf32> -> vector<8x16xf32>
    %190 = vector.extract_strided_slice %36 {offsets = [32, 0], sizes = [16, 64], strides = [1, 1]} : vector<64x64xf32> to vector<16x64xf32>
    %cst_72 = arith.constant dense<0.000000e+00> : vector<8x64xf32>
    %191 = tpu.matmul %189, %190, %cst_72 {dimension_numbers = #tpu.dot_dimension_numbers<[1], [0], [0], [1], [0, 0, 1, 1], [], []>} : vector<8x16xf32>, vector<16x64xf32>, vector<8x64xf32> -> vector<8x64xf32>
    %192 = arith.addf %170, %191 : vector<8x64xf32>
    %193 = vector.extract_strided_slice %34 {offsets = [8, 48], sizes = [8, 16], strides = [1, 1]} : vector<16x192xf32> to vector<8x16xf32>
    %194 = vector.extract_strided_slice %34 {offsets = [8, 112], sizes = [8, 16], strides = [1, 1]} : vector<16x192xf32> to vector<8x16xf32>
    %195 = vector.extract_strided_slice %34 {offsets = [8, 176], sizes = [8, 16], strides = [1, 1]} : vector<16x192xf32> to vector<8x16xf32>
    %cst_73 = arith.constant dense<0.000000e+00> : vector<8x8xf32>
    %196 = tpu.matmul %193, %194, %cst_73 {dimension_numbers = #tpu.dot_dimension_numbers<[1], [1], [0], [0], [0, 0, 1, 0], [], []>} : vector<8x16xf32>, vector<8x16xf32>, vector<8x8xf32> -> vector<8x8xf32>
    %cst_74 = arith.constant 2.500000e-01 : f32
    %197 = vector.broadcast %cst_74 : f32 to vector<8x8xf32>
    %198 = arith.mulf %196, %197 : vector<8x8xf32>
    %cst_75 = arith.constant -1.000000e+30 : f32
    %199 = vector.broadcast %cst_75 : f32 to vector<8x8xf32>
    %200 = arith.select %39, %198, %199 : vector<8x8xi1>, vector<8x8xf32>
    %cst_76 = arith.constant dense<0xFF800000> : vector<8xf32>
    %201 = vector.multi_reduction <maximumf>, %200, %cst_76 [1] : vector<8x8xf32> to vector<8xf32>
    %202 = vector.shape_cast %201 : vector<8xf32> to vector<8x1xf32>
    %203 = vector.broadcast %202 : vector<8x1xf32> to vector<8x8xf32>
    %204 = arith.subf %200, %203 : vector<8x8xf32>
    %205 = math.exp %204 : vector<8x8xf32>
    %cst_77 = arith.constant dense<0.000000e+00> : vector<8xf32>
    %206 = vector.multi_reduction <add>, %205, %cst_77 [1] : vector<8x8xf32> to vector<8xf32>
    %207 = vector.shape_cast %206 : vector<8xf32> to vector<8x1xf32>
    %208 = tpu.reciprocal %207 {approx = true} : vector<8x1xf32> -> vector<8x1xf32>
    %209 = vector.broadcast %208 : vector<8x1xf32> to vector<8x8xf32>
    %210 = arith.mulf %205, %209 : vector<8x8xf32>
    %cst_78 = arith.constant dense<0.000000e+00> : vector<8x16xf32>
    %211 = tpu.matmul %210, %195, %cst_78 {dimension_numbers = #tpu.dot_dimension_numbers<[1], [0], [0], [1], [0, 0, 1, 1], [], []>} : vector<8x8xf32>, vector<8x16xf32>, vector<8x16xf32> -> vector<8x16xf32>
    %212 = vector.extract_strided_slice %36 {offsets = [48, 0], sizes = [16, 64], strides = [1, 1]} : vector<64x64xf32> to vector<16x64xf32>
    %cst_79 = arith.constant dense<0.000000e+00> : vector<8x64xf32>
    %213 = tpu.matmul %211, %212, %cst_79 {dimension_numbers = #tpu.dot_dimension_numbers<[1], [0], [0], [1], [0, 0, 1, 1], [], []>} : vector<8x16xf32>, vector<16x64xf32>, vector<8x64xf32> -> vector<8x64xf32>
    %214 = arith.addf %192, %213 : vector<8x64xf32>
    %c8 = arith.constant 8 : index
    %c0_80 = arith.constant 0 : index
    %215 = vector.load %arg24[%c8, %c0_80] : memref<16x64xf32, #tpu.memory_space<vmem>>, vector<8x64xf32>
    tpu.vector_store %arg24[%c8, %c0_80], %214 {strides = array<i32>} : memref<16x64xf32, #tpu.memory_space<vmem>>, vector<8x64xf32>,
    %c0_81 = arith.constant 0 : index
    %c0_82 = arith.constant 0 : index
    %216 = vector.load %arg24[%c0_81, %c0_82] : memref<16x64xf32, #tpu.memory_space<vmem>>, vector<16x64xf32>
    %217 = arith.addf %3, %216 : vector<16x64xf32>
    %c0_83 = arith.constant 0 : index
    %c0_84 = arith.constant 0 : index
    %c0_85 = arith.constant 0 : index
    %218 = vector.load %arg11[%c0_83, %c0_84, %c0_85] : memref<1x1x64xf32, #tpu.memory_space<vmem>>, vector<1x1x64xf32>
    %219 = vector.shape_cast %218 : vector<1x1x64xf32> to vector<1x64xf32>
    %220 = vector.broadcast %219 : vector<1x64xf32> to vector<16x64xf32>
    %221 = arith.addf %217, %220 : vector<16x64xf32>
    %c0_86 = arith.constant 0 : index
    %c0_87 = arith.constant 0 : index
    %c0_88 = arith.constant 0 : index
    %222 = vector.load %arg12[%c0_86, %c0_87, %c0_88] : memref<1x1x64xf32, #tpu.memory_space<vmem>>, vector<1x1x64xf32>
    %223 = vector.shape_cast %222 : vector<1x1x64xf32> to vector<1x64xf32>
    %c0_89 = arith.constant 0 : index
    %c0_90 = arith.constant 0 : index
    %c0_91 = arith.constant 0 : index
    %224 = vector.load %arg13[%c0_89, %c0_90, %c0_91] : memref<1x1x64xf32, #tpu.memory_space<vmem>>, vector<1x1x64xf32>
    %225 = vector.shape_cast %224 : vector<1x1x64xf32> to vector<1x64xf32>
    %cst_92 = arith.constant dense<0.000000e+00> : vector<16xf32>
    %226 = vector.multi_reduction <add>, %221, %cst_92 [1] : vector<16x64xf32> to vector<16xf32>
    %227 = vector.shape_cast %226 : vector<16xf32> to vector<16x1xf32>
    %cst_93 = arith.constant 6.400000e+01 : f32
    %228 = vector.broadcast %cst_93 : f32 to vector<16x1xf32>
    %229 = arith.divf %227, %228 : vector<16x1xf32>
    %230 = vector.broadcast %229 : vector<16x1xf32> to vector<16x64xf32>
    %231 = arith.subf %221, %230 : vector<16x64xf32>
    %232 = arith.mulf %231, %231 : vector<16x64xf32>
    %cst_94 = arith.constant dense<0.000000e+00> : vector<16xf32>
    %233 = vector.multi_reduction <add>, %232, %cst_94 [1] : vector<16x64xf32> to vector<16xf32>
    %234 = vector.shape_cast %233 : vector<16xf32> to vector<16x1xf32>
    %cst_95 = arith.constant 6.400000e+01 : f32
    %235 = vector.broadcast %cst_95 : f32 to vector<16x1xf32>
    %236 = arith.divf %234, %235 : vector<16x1xf32>
    %cst_96 = arith.constant 9.99999997E-7 : f32
    %237 = vector.broadcast %cst_96 : f32 to vector<16x1xf32>
    %238 = arith.addf %236, %237 : vector<16x1xf32>
    %239 = math.rsqrt %238 : vector<16x1xf32>
    %240 = vector.broadcast %239 : vector<16x1xf32> to vector<16x64xf32>
    %241 = arith.mulf %231, %240 : vector<16x64xf32>
    %242 = vector.broadcast %223 : vector<1x64xf32> to vector<16x64xf32>
    %243 = arith.mulf %241, %242 : vector<16x64xf32>
    %244 = vector.broadcast %225 : vector<1x64xf32> to vector<16x64xf32>
    %245 = arith.addf %243, %244 : vector<16x64xf32>
    %c0_97 = arith.constant 0 : index
    %c0_98 = arith.constant 0 : index
    %c0_99 = arith.constant 0 : index
    %246 = vector.load %arg14[%c0_97, %c0_98, %c0_99] : memref<1x64x128xf32, #tpu.memory_space<vmem>>, vector<1x64x128xf32>
    %247 = vector.shape_cast %246 : vector<1x64x128xf32> to vector<64x128xf32>
    %cst_100 = arith.constant dense<0.000000e+00> : vector<16x128xf32>
    %248 = tpu.matmul %245, %247, %cst_100 {dimension_numbers = #tpu.dot_dimension_numbers<[1], [0], [0], [1], [0, 0, 1, 1], [], []>} : vector<16x64xf32>, vector<64x128xf32>, vector<16x128xf32> -> vector<16x128xf32>
    %c0_101 = arith.constant 0 : index
    %c0_102 = arith.constant 0 : index
    %c0_103 = arith.constant 0 : index
    %249 = vector.load %arg15[%c0_101, %c0_102, %c0_103] : memref<1x1x128xf32, #tpu.memory_space<vmem>>, vector<1x1x128xf32>
    %250 = vector.shape_cast %249 : vector<1x1x128xf32> to vector<1x128xf32>
    %251 = vector.broadcast %250 : vector<1x128xf32> to vector<16x128xf32>
    %252 = arith.addf %248, %251 : vector<16x128xf32>
    %cst_104 = arith.constant 5.000000e-01 : f32
    %253 = vector.broadcast %cst_104 : f32 to vector<16x128xf32>
    %254 = arith.mulf %253, %252 : vector<16x128xf32>
    %cst_105 = arith.constant 0.707106769 : f32
    %255 = vector.broadcast %cst_105 : f32 to vector<16x128xf32>
    %256 = arith.mulf %252, %255 : vector<16x128xf32>
    %257 = math.erf %256 : vector<16x128xf32>
    %cst_106 = arith.constant 1.000000e+00 : f32
    %258 = vector.broadcast %cst_106 : f32 to vector<16x128xf32>
    %259 = arith.addf %258, %257 : vector<16x128xf32>
    %260 = arith.mulf %254, %259 : vector<16x128xf32>
    %c0_107 = arith.constant 0 : index
    %c0_108 = arith.constant 0 : index
    %c0_109 = arith.constant 0 : index
    %261 = vector.load %arg16[%c0_107, %c0_108, %c0_109] : memref<1x128x64xf32, #tpu.memory_space<vmem>>, vector<1x128x64xf32>
    %262 = vector.shape_cast %261 : vector<1x128x64xf32> to vector<128x64xf32>
    %cst_110 = arith.constant dense<0.000000e+00> : vector<16x64xf32>
    %263 = tpu.matmul %260, %262, %cst_110 {dimension_numbers = #tpu.dot_dimension_numbers<[1], [0], [0], [1], [0, 0, 1, 1], [], []>} : vector<16x128xf32>, vector<128x64xf32>, vector<16x64xf32> -> vector<16x64xf32>
    %c0_111 = arith.constant 0 : index
    %c0_112 = arith.constant 0 : index
    %c0_113 = arith.constant 0 : index
    %264 = vector.load %arg17[%c0_111, %c0_112, %c0_113] : memref<1x1x64xf32, #tpu.memory_space<vmem>>, vector<1x1x64xf32>
    %265 = vector.shape_cast %264 : vector<1x1x64xf32> to vector<1x64xf32>
    %266 = vector.broadcast %265 : vector<1x64xf32> to vector<16x64xf32>
    %267 = arith.addf %263, %266 : vector<16x64xf32>
    %268 = arith.addf %221, %267 : vector<16x64xf32>
    %c0_114 = arith.constant 0 : index
    %c0_115 = arith.constant 0 : index
    %269 = vector.load %arg23[%c0_114, %c0_115] : memref<16x64xf32, #tpu.memory_space<vmem>>, vector<16x64xf32>
    tpu.vector_store %arg23[%c0_114, %c0_115], %268 {strides = array<i32>} : memref<16x64xf32, #tpu.memory_space<vmem>>, vector<16x64xf32>,
    %c1_i32 = arith.constant 1 : i32
    %270 = arith.cmpi eq, %arg0, %c1_i32 : i32
    %271 = arith.extui %270 : i1 to i32
    %c0_i32_116 = arith.constant 0 : i32
    %272 = arith.cmpi ne, %271, %c0_i32_116 : i32
    scf.if %272 {
      %c0_117 = arith.constant 0 : index
      %c0_118 = arith.constant 0 : index
      %273 = vector.load %arg18[%c0_117, %c0_118] : memref<1x64xf32, #tpu.memory_space<vmem>>, vector<1x64xf32>
      %c0_119 = arith.constant 0 : index
      %c0_120 = arith.constant 0 : index
      %274 = vector.load %arg19[%c0_119, %c0_120] : memref<1x64xf32, #tpu.memory_space<vmem>>, vector<1x64xf32>
      %cst_121 = arith.constant dense<0.000000e+00> : vector<16xf32>
      %275 = vector.multi_reduction <add>, %268, %cst_121 [1] : vector<16x64xf32> to vector<16xf32>
      %276 = vector.shape_cast %275 : vector<16xf32> to vector<16x1xf32>
      %cst_122 = arith.constant 6.400000e+01 : f32
      %277 = vector.broadcast %cst_122 : f32 to vector<16x1xf32>
      %278 = arith.divf %276, %277 : vector<16x1xf32>
      %279 = vector.broadcast %278 : vector<16x1xf32> to vector<16x64xf32>
      %280 = arith.subf %268, %279 : vector<16x64xf32>
      %281 = arith.mulf %280, %280 : vector<16x64xf32>
      %cst_123 = arith.constant dense<0.000000e+00> : vector<16xf32>
      %282 = vector.multi_reduction <add>, %281, %cst_123 [1] : vector<16x64xf32> to vector<16xf32>
      %283 = vector.shape_cast %282 : vector<16xf32> to vector<16x1xf32>
      %cst_124 = arith.constant 6.400000e+01 : f32
      %284 = vector.broadcast %cst_124 : f32 to vector<16x1xf32>
      %285 = arith.divf %283, %284 : vector<16x1xf32>
      %cst_125 = arith.constant 9.99999997E-7 : f32
      %286 = vector.broadcast %cst_125 : f32 to vector<16x1xf32>
      %287 = arith.addf %285, %286 : vector<16x1xf32>
      %288 = math.rsqrt %287 : vector<16x1xf32>
      %289 = vector.broadcast %288 : vector<16x1xf32> to vector<16x64xf32>
      %290 = arith.mulf %280, %289 : vector<16x64xf32>
      %291 = vector.broadcast %273 : vector<1x64xf32> to vector<16x64xf32>
      %292 = arith.mulf %290, %291 : vector<16x64xf32>
      %293 = vector.broadcast %274 : vector<1x64xf32> to vector<16x64xf32>
      %294 = arith.addf %292, %293 : vector<16x64xf32>
      %c0_126 = arith.constant 0 : index
      %c0_127 = arith.constant 0 : index
      %295 = vector.load %arg20[%c0_126, %c0_127] : memref<64x128xf32, #tpu.memory_space<vmem>>, vector<64x128xf32>
      %cst_128 = arith.constant dense<0.000000e+00> : vector<16x128xf32>
      %296 = tpu.matmul %294, %295, %cst_128 {dimension_numbers = #tpu.dot_dimension_numbers<[1], [0], [0], [1], [0, 0, 1, 1], [], []>} : vector<16x64xf32>, vector<64x128xf32>, vector<16x128xf32> -> vector<16x128xf32>
      %c0_129 = arith.constant 0 : index
      %c0_130 = arith.constant 0 : index
      %297 = vector.load %arg21[%c0_129, %c0_130] : memref<1x128xf32, #tpu.memory_space<vmem>>, vector<1x128xf32>
      %298 = vector.broadcast %297 : vector<1x128xf32> to vector<16x128xf32>
      %299 = arith.addf %296, %298 : vector<16x128xf32>
      %300 = vector.extract_strided_slice %299 {offsets = [0, 0], sizes = [1, 128], strides = [1, 1]} : vector<16x128xf32> to vector<1x128xf32>
      %c0_131 = arith.constant 0 : index
      %c0_132 = arith.constant 0 : index
      %301 = vector.load %arg22[%c0_131, %c0_132] : memref<2x128xf32, #tpu.memory_space<vmem>>, vector<1x128xf32>
      tpu.vector_store %arg22[%c0_131, %c0_132], %300 {strides = array<i32>} : memref<2x128xf32, #tpu.memory_space<vmem>>, vector<1x128xf32>,
      %302 = vector.extract_strided_slice %299 {offsets = [8, 0], sizes = [1, 128], strides = [1, 1]} : vector<16x128xf32> to vector<1x128xf32>
      %c1 = arith.constant 1 : index
      %c0_133 = arith.constant 0 : index
      %303 = vector.load %arg22[%c1, %c0_133] : memref<2x128xf32, #tpu.memory_space<vmem>>, vector<1x128xf32>
      tpu.vector_store %arg22[%c1, %c0_133], %302 {strides = array<i32>} : memref<2x128xf32, #tpu.memory_space<vmem>>, vector<1x128xf32>,
    } else {
    }
    return
  }
  func.func @transform_0(%arg0: i32) -> (i32, i32) {
    %c0_i32 = arith.constant 0 : i32
    %c0_i32_0 = arith.constant 0 : i32
    %c0_i32_1 = arith.constant 0 : i32
    return %c0_i32, %c0_i32_0 : i32, i32
  }
  func.func @transform_1(%arg0: i32) -> (i32, i32) {
    %c0_i32 = arith.constant 0 : i32
    %c0_i32_0 = arith.constant 0 : i32
    %c0_i32_1 = arith.constant 0 : i32
    return %c0_i32, %c0_i32_0 : i32, i32
  }
  func.func @transform_2(%arg0: i32) -> (i32, i32) {
    %c0_i32 = arith.constant 0 : i32
    %c0_i32_0 = arith.constant 0 : i32
    %c0_i32_1 = arith.constant 0 : i32
    return %c0_i32, %c0_i32_0 : i32, i32
  }
  func.func @transform_3(%arg0: i32) -> (i32, i32) {
    %c0_i32 = arith.constant 0 : i32
    %c0_i32_0 = arith.constant 0 : i32
    %c0_i32_1 = arith.constant 0 : i32
    return %c0_i32, %c0_i32_0 : i32, i32
  }
  func.func @transform_4(%arg0: i32) -> (i32, i32) {
    %c0_i32 = arith.constant 0 : i32
    %c0_i32_0 = arith.constant 0 : i32
    %c0_i32_1 = arith.constant 0 : i32
    return %c0_i32, %c0_i32_0 : i32, i32
  }
  func.func @transform_5(%arg0: i32) -> (i32, i32, i32) {
    %c0_i32 = arith.constant 0 : i32
    %c0_i32_0 = arith.constant 0 : i32
    %c0_i32_1 = arith.constant 0 : i32
    return %arg0, %c0_i32, %c0_i32_0 : i32, i32, i32
  }
  func.func @transform_6(%arg0: i32) -> (i32, i32, i32) {
    %c0_i32 = arith.constant 0 : i32
    %c0_i32_0 = arith.constant 0 : i32
    %c0_i32_1 = arith.constant 0 : i32
    return %arg0, %c0_i32, %c0_i32_0 : i32, i32, i32
  }
  func.func @transform_7(%arg0: i32) -> (i32, i32, i32) {
    %c0_i32 = arith.constant 0 : i32
    %c0_i32_0 = arith.constant 0 : i32
    %c0_i32_1 = arith.constant 0 : i32
    return %arg0, %c0_i32, %c0_i32_0 : i32, i32, i32
  }
  func.func @transform_8(%arg0: i32) -> (i32, i32, i32) {
    %c0_i32 = arith.constant 0 : i32
    %c0_i32_0 = arith.constant 0 : i32
    %c0_i32_1 = arith.constant 0 : i32
    return %arg0, %c0_i32, %c0_i32_0 : i32, i32, i32
  }
  func.func @transform_9(%arg0: i32) -> (i32, i32, i32) {
    %c0_i32 = arith.constant 0 : i32
    %c0_i32_0 = arith.constant 0 : i32
    %c0_i32_1 = arith.constant 0 : i32
    return %arg0, %c0_i32, %c0_i32_0 : i32, i32, i32
  }
  func.func @transform_10(%arg0: i32) -> (i32, i32, i32) {
    %c0_i32 = arith.constant 0 : i32
    %c0_i32_0 = arith.constant 0 : i32
    %c0_i32_1 = arith.constant 0 : i32
    return %arg0, %c0_i32, %c0_i32_0 : i32, i32, i32
  }
  func.func @transform_11(%arg0: i32) -> (i32, i32, i32) {
    %c0_i32 = arith.constant 0 : i32
    %c0_i32_0 = arith.constant 0 : i32
    %c0_i32_1 = arith.constant 0 : i32
    return %arg0, %c0_i32, %c0_i32_0 : i32, i32, i32
  }
  func.func @transform_12(%arg0: i32) -> (i32, i32, i32) {
    %c0_i32 = arith.constant 0 : i32
    %c0_i32_0 = arith.constant 0 : i32
    %c0_i32_1 = arith.constant 0 : i32
    return %arg0, %c0_i32, %c0_i32_0 : i32, i32, i32
  }
  func.func @transform_13(%arg0: i32) -> (i32, i32, i32) {
    %c0_i32 = arith.constant 0 : i32
    %c0_i32_0 = arith.constant 0 : i32
    %c0_i32_1 = arith.constant 0 : i32
    return %arg0, %c0_i32, %c0_i32_0 : i32, i32, i32
  }
  func.func @transform_14(%arg0: i32) -> (i32, i32, i32) {
    %c0_i32 = arith.constant 0 : i32
    %c0_i32_0 = arith.constant 0 : i32
    %c0_i32_1 = arith.constant 0 : i32
    return %arg0, %c0_i32, %c0_i32_0 : i32, i32, i32
  }
  func.func @transform_15(%arg0: i32) -> (i32, i32, i32) {
    %c0_i32 = arith.constant 0 : i32
    %c0_i32_0 = arith.constant 0 : i32
    %c0_i32_1 = arith.constant 0 : i32
    return %arg0, %c0_i32, %c0_i32_0 : i32, i32, i32
  }
  func.func @transform_16(%arg0: i32) -> (i32, i32, i32) {
    %c0_i32 = arith.constant 0 : i32
    %c0_i32_0 = arith.constant 0 : i32
    %c0_i32_1 = arith.constant 0 : i32
    return %arg0, %c0_i32, %c0_i32_0 : i32, i32, i32
  }
  func.func @transform_17(%arg0: i32) -> (i32, i32) {
    %c0_i32 = arith.constant 0 : i32
    %c0_i32_0 = arith.constant 0 : i32
    %c0_i32_1 = arith.constant 0 : i32
    return %c0_i32, %c0_i32_0 : i32, i32
  }
  func.func @transform_18(%arg0: i32) -> (i32, i32) {
    %c0_i32 = arith.constant 0 : i32
    %c0_i32_0 = arith.constant 0 : i32
    %c0_i32_1 = arith.constant 0 : i32
    return %c0_i32, %c0_i32_0 : i32, i32
  }
  func.func @transform_19(%arg0: i32) -> (i32, i32) {
    %c0_i32 = arith.constant 0 : i32
    %c0_i32_0 = arith.constant 0 : i32
    %c0_i32_1 = arith.constant 0 : i32
    return %c0_i32, %c0_i32_0 : i32, i32
  }
  func.func @transform_20(%arg0: i32) -> (i32, i32) {
    %c0_i32 = arith.constant 0 : i32
    %c0_i32_0 = arith.constant 0 : i32
    %c0_i32_1 = arith.constant 0 : i32
    return %c0_i32, %c0_i32_0 : i32, i32
  }
  func.func @transform_21(%arg0: i32) -> (i32, i32) {
    %c0_i32 = arith.constant 0 : i32
    %c0_i32_0 = arith.constant 0 : i32
    %c0_i32_1 = arith.constant 0 : i32
    return %c0_i32, %c0_i32_0 : i32, i32
  }
}

</mosaic_0001>

<bundles_post_ra>
// kernel: vit_forward.1
= control target key start
LH: loop header
LB: loop body
LE: loop exit
PB: predicated region body
PF: predicated region fallthrough
CT: control target
= control target key end

     0   :  { %s3539_s0 = inlined_call_operand.vmem [shape: f32[8,768], index: 0, kind: input, shape index: {}]   ;;  %s3540_s1 = inlined_call_operand.vmem [shape: f32[768,64], index: 1, kind: input, shape index: {}]   ;;  %s3541_s2 = inlined_call_operand.vmem [shape: f32[1,64], index: 2, kind: input, shape index: {}]   ;;  %s3542_s3 = inlined_call_operand.vmem [shape: f32[1,64], index: 3, kind: input, shape index: {}]   ;;  %s3543_s4 = inlined_call_operand.vmem [shape: f32[5,64], index: 4, kind: input, shape index: {}]   ;;  %s3544_s5 = inlined_call_operand.vmem [shape: f32[2,1,64], index: 5, kind: input, shape index: {}]   ;;  %s3545_s6 = inlined_call_operand.vmem [shape: f32[2,1,64], index: 6, kind: input, shape index: {}]   ;;  %s3546_s7 = inlined_call_operand.vmem [shape: f32[2,64,192], index: 7, kind: input, shape index: {}]   ;;  %s3547_s8 = inlined_call_operand.vmem [shape: f32[2,1,192], index: 8, kind: input, shape index: {}]   ;;  %s3548_s9 = inlined_call_operand.vmem [shape: f32[2,64,64], index: 9, kind: input, shape index: {}]   ;;  %s3549_s10 = inlined_call_operand.vmem [shape: f32[2,1,64], index: 10, kind: input, shape index: {}]   ;;  %s3550_s11 = inlined_call_operand.vmem [shape: f32[2,1,64], index: 11, kind: input, shape index: {}]   ;;  %s3551_s12 = inlined_call_operand.vmem [shape: f32[2,1,64], index: 12, kind: input, shape index: {}]   ;;  %s3552_s13 = inlined_call_operand.vmem [shape: f32[2,64,128], index: 13, kind: input, shape index: {}]   ;;  %s3553_s14 = inlined_call_operand.vmem [shape: f32[2,1,128], index: 14, kind: input, shape index: {}]   ;;  %s3554_s15 = inlined_call_operand.vmem [shape: f32[2,128,64], index: 15, kind: input, shape index: {}]   ;;  %s3555_s16 = inlined_call_operand.vmem [shape: f32[2,1,64], index: 16, kind: input, shape index: {}]   ;;  %s3556_s17 = inlined_call_operand.vmem [shape: f32[1,64], index: 17, kind: input, shape index: {}]   ;;  %s3557_s18 = inlined_call_operand.vmem [shape: f32[1,64], index: 18, kind: input, shape index: {}]   ;;  %s3558_s19 = inlined_call_operand.vmem [shape: f32[64,128], index: 19, kind: input, shape index: {}]   ;;  %s3559_s20 = inlined_call_operand.vmem [shape: f32[1,128], index: 20, kind: input, shape index: {}]   ;;  %s3560_s21 = inlined_call_operand.hbm [shape: f32[2,128], index: 21, kind: output, shape index: {}]  }
   0x1   :  { %3564 = sst [smem:[#allocation8_spill]] %s3539_s0 }
   0x2   :  { %3565 = sst [smem:[#allocation9_spill]] %s3540_s1 }
   0x3   :  { %3566 = sst [smem:[#allocation10_spill]] %s3541_s2 }
   0x4   :  { %3567 = sst [smem:[#allocation11_spill]] %s3542_s3 }
   0x5   :  { %3568 = sst [smem:[#allocation12_spill]] %s3543_s4 }
   0x6   :  { %3569 = sst [smem:[#allocation13_spill]] %s3544_s5 }
   0x7   :  { %3570 = sst [smem:[#allocation14_spill]] %s3546_s7 }
   0x8   :  { %3571 = sst [smem:[#allocation15_spill]] %s3547_s8 }
   0x9   :  { %3572 = sst [smem:[#allocation16_spill]] %s3548_s9 }
   0xa   :  { %3573 = sst [smem:[#allocation17_spill]] %s3556_s17 }
   0xb   :  { %3574 = sst [smem:[#allocation18_spill]] %s3557_s18 }
   0xc   :  { %3575 = sst [smem:[#allocation19_spill]] %s3559_s20 }
   0xd   :  { %3576 = sst [smem:[#allocation20_spill]] %s3560_s21 }
   0xe   :  { %26 = vsyncpa [#allocation5], 0  ;;  %s2772_s2 = smov 0  }
   0xf LB: > { %3577 = sst [smem:[#allocation7_spill]] %s2650_s2  ;;  %s2778_s25 = sadd.s32 4294967295, %s2650_s2   ;;  %s2650_s2 = sphi %s2772_s2, %s32_s2  }
  0x10   : > { %p2449_p0 = scmp.ge.s32.totalorder %s2650_s2, 1  ;;  %p678_p1 = scmp.lt.s32.totalorder %s2650_s2, 3 }
  0x12   : > { %p679_p2 = pnand %p2449_p0, %p678_p1 }
  0x13   : > { %p773_p3 = scmp.lt.s32.totalorder (!%p679_p2), %s2778_s25, 1  ;;  %s3579_s7 = sld [smem:[#allocation14_spill]] (!%p679_p2) }
  0x14   : > { %682 = sbr.rel (%p679_p2) target bundleno = 4292 (0x10c4), region = 104  ;;  %s3580_s8 = sld [smem:[#allocation15_spill]] (!%p679_p2) }
  0x15   : > { %s3581_s9 = sld [smem:[#allocation16_spill]] (!%p679_p2)  ;;  %p2459_p4 = scmp.ne.s32.totalorder (!%p679_p2), %s2778_s25, 0 }
  0x19   : > { %s2784_s26 = scalar_select %p773_p3, %s2778_s25, 1 }
  0x1a   : > { %s3583_s20 = sld [smem:[#allocation8_spill]] (!%p2459_p4) }
  0x1b   : > { %s2507_s5 = sshll.u32 %s2784_s26, 7  ;;  %s2452_s22 = sshll.u32 %s2784_s26, 1 }
  0x1c   : > { %s2799_s24 = scalar_lea.vmem %s3579_s7, %s2507_s5  ;;  %s2804_s2 = scalar_lea.vmem %s3580_s8, %s2452_s22 }
  0x1d   : > { %s2508_s21 = sshll.u32 %s2784_s26, 6  ;;  %s801_s27 = scalar_lea.vmem %s3551_s12, %s2784_s26 }
  0x1e   : > { %s2814_s4 = scalar_lea.vmem %s3581_s9, %s2508_s21  ;;  %s2827_s8 = scalar_lea.vmem %s3552_s13, %s2508_s21 }
  0x1f   : > { %s809_s28 = scalar_lea.vmem %s3553_s14, %s2784_s26  ;;  %s2836_s9 = scalar_lea.vmem %s3554_s15, %s2507_s5 }
  0x20   : > { %s817_s23 = scalar_lea.vmem %s3555_s16, %s2784_s26  ;;  %821 = sbr.rel (%p2459_p4) target bundleno = 237 (0xed), region = 108 }
  0x21   : > { %s3582_s21 = sld [smem:[#allocation9_spill]] (!%p2459_p4) }
  0x22   : > { %s3584_s3 = sld [smem:[#allocation12_spill]] (!%p2459_p4) }
  0x23   : > { %s3585_s29 = sld [smem:[#allocation11_spill]] (!%p2459_p4) }
  0x24   : > { %s3586_s30 = sld [smem:[#allocation10_spill]] (!%p2459_p4) }
  0x25   : > { %vm1051_vm0 = vcmask 523264   ;;  %vm1054_vm1 = vcmask 516096   ;;  %vm1060_vm2 = vcmask 519168   ;;  %vm1066_vm3 = vcmask 523268  }
  0x27   : > { %v843_v0 = vld [vmem:[%s3582_s21 + $0x78] sm:$0xff]  ;;  %v842_v1 = vld [vmem:[%s3582_s21 + $0x70] sm:$0xff]  ;;  %v841_v4 = vld [vmem:[%s3582_s21 + $0x68] sm:$0xff] }
  0x28   : > { %v859_v2 = vld [vmem:[%s3582_s21 + $0xf8] sm:$0xff]  ;;  %928 = vmatpush.msra.mxu0 %v843_v0  ;;  %v858_v3 = vld [vmem:[%s3582_s21 + $0xf0] sm:$0xff]  ;;  %v857_v5 = vld [vmem:[%s3582_s21 + $0xe8] sm:$0xff] }
  0x29   : > { %948 = vmatpush.msra.mxu1 %v859_v2  ;;  %v840_v6 = vld [vmem:[%s3582_s21 + $0x60] sm:$0xff]  ;;  %v839_v8 = vld [vmem:[%s3582_s21 + $0x58] sm:$0xff]  ;;  %v838_v10 = vld [vmem:[%s3582_s21 + $0x50] sm:$0xff] }
  0x2a   : > { %929 = vmatpush.msra.mxu0 %v842_v1  ;;  %v856_v7 = vld [vmem:[%s3582_s21 + $0xe0] sm:$0xff]  ;;  %v855_v9 = vld [vmem:[%s3582_s21 + $0xd8] sm:$0xff]  ;;  %v854_v12 = vld [vmem:[%s3582_s21 + $0xd0] sm:$0xff] }
  0x2b   : > { %949 = vmatpush.msra.mxu1 %v858_v3  ;;  %v875_v11 = vld [vmem:[%s3582_s21 + $0x178] sm:$0xff]  ;;  %v874_v13 = vld [vmem:[%s3582_s21 + $0x170] sm:$0xff]  ;;  %v873_v15 = vld [vmem:[%s3582_s21 + $0x168] sm:$0xff] }
  0x2c   : > { %930 = vmatpush.msra.mxu0 %v841_v4  ;;  %968 = vmatpush.msra.mxu2 %v875_v11  ;;  %v891_v14 = vld [vmem:[%s3582_s21 + $0x1f8] sm:$0xff]  ;;  %v890_v16 = vld [vmem:[%s3582_s21 + $0x1f0] sm:$0xff]  ;;  %v837_v17 = vld [vmem:[%s3582_s21 + $0x48] sm:$0xff] }
  0x2d   : > { %950 = vmatpush.msra.mxu1 %v857_v5  ;;  %v853_v18 = vld [vmem:[%s3582_s21 + $0xc8] sm:$0xff]  ;;  %988 = vmatpush.msra.mxu3 %v891_v14  ;;  %v872_v19 = vld [vmem:[%s3582_s21 + $0x160] sm:$0xff]  ;;  %v871_v23 = vld [vmem:[%s3582_s21 + $0x158] sm:$0xff] }
  0x2e   : > { %931 = vmatpush.msra.mxu0 %v840_v6  ;;  %969 = vmatpush.msra.mxu2 %v874_v13  ;;  %v889_v20 = vld [vmem:[%s3582_s21 + $0x1e8] sm:$0xff]  ;;  %v836_v21 = vld [vmem:[%s3582_s21 + $0x40] sm:$0xff]  ;;  %v835_v25 = vld [vmem:[%s3582_s21 + $0x38] sm:$0xff] }
  0x2f   : > { %951 = vmatpush.msra.mxu1 %v856_v7  ;;  %v852_v22 = vld [vmem:[%s3582_s21 + $0xc0] sm:$0xff]  ;;  %989 = vmatpush.msra.mxu3 %v890_v16  ;;  %v851_v26 = vld [vmem:[%s3582_s21 + $0xb8] sm:$0xff]  ;;  %v870_v27 = vld [vmem:[%s3582_s21 + $0x150] sm:$0xff] }
  0x30   : > { %932 = vmatpush.msra.mxu0 %v839_v8  ;;  %970 = vmatpush.msra.mxu2 %v873_v15  ;;  %v888_v24 = vld [vmem:[%s3582_s21 + $0x1e0] sm:$0xff]  ;;  %v887_v28 = vld [vmem:[%s3582_s21 + $0x1d8] sm:$0xff]  ;;  %v834_v29 = vld [vmem:[%s3582_s21 + $0x30] sm:$0xff] }
  0x31   : > { %952 = vmatpush.msra.mxu1 %v855_v9  ;;  %990 = vmatpush.msra.mxu3 %v889_v20  ;;  %v850_v30 = vld [vmem:[%s3582_s21 + $0xb0] sm:$0xff]  ;;  %v869_v31 = vld [vmem:[%s3582_s21 + $0x148] sm:$0xff]  ;;  %v868_v35 = vld [vmem:[%s3582_s21 + $0x140] sm:$0xff] }
  0x32   : > { %933 = vmatpush.msra.mxu0 %v838_v10  ;;  %971 = vmatpush.msra.mxu2 %v872_v19  ;;  %v886_v32 = vld [vmem:[%s3582_s21 + $0x1d0] sm:$0xff]  ;;  %v833_v33 = vld [vmem:[%s3582_s21 + $0x28] sm:$0xff]  ;;  %v832_v37 = vld [vmem:[%s3582_s21 + $0x20] sm:$0xff] }
  0x33   : > { %953 = vmatpush.msra.mxu1 %v854_v12  ;;  %991 = vmatpush.msra.mxu3 %v888_v24  ;;  %v849_v34 = vld [vmem:[%s3582_s21 + $0xa8] sm:$0xff]  ;;  %v848_v38 = vld [vmem:[%s3582_s21 + $0xa0] sm:$0xff]  ;;  %v867_v39 = vld [vmem:[%s3582_s21 + $0x138] sm:$0xff] }
  0x34   : > { %934 = vmatpush.msra.mxu0 %v837_v17  ;;  %972 = vmatpush.msra.mxu2 %v871_v23  ;;  %v885_v36 = vld [vmem:[%s3582_s21 + $0x1c8] sm:$0xff]  ;;  %v884_v40 = vld [vmem:[%s3582_s21 + $0x1c0] sm:$0xff]  ;;  %v831_v41 = vld [vmem:[%s3582_s21 + $0x18] sm:$0xff] }
  0x35   : > { %954 = vmatpush.msra.mxu1 %v853_v18  ;;  %992 = vmatpush.msra.mxu3 %v887_v28  ;;  %v847_v42 = vld [vmem:[%s3582_s21 + $0x98] sm:$0xff]  ;;  %v866_v43 = vld [vmem:[%s3582_s21 + $0x130] sm:$0xff]  ;;  %v865_v47 = vld [vmem:[%s3582_s21 + $0x128] sm:$0xff] }
  0x36   : > { %935 = vmatpush.msra.mxu0 %v836_v21  ;;  %973 = vmatpush.msra.mxu2 %v870_v27  ;;  %v883_v44 = vld [vmem:[%s3582_s21 + $0x1b8] sm:$0xff]  ;;  %v830_v45 = vld [vmem:[%s3582_s21 + $0x10] sm:$0xff]  ;;  %v829_v49 = vld [vmem:[%s3582_s21 + $0x8] sm:$0xff] }
  0x37   : > { %955 = vmatpush.msra.mxu1 %v852_v22  ;;  %993 = vmatpush.msra.mxu3 %v886_v32  ;;  %v846_v46 = vld [vmem:[%s3582_s21 + $0x90] sm:$0xff]  ;;  %v845_v50 = vld [vmem:[%s3582_s21 + $0x88] sm:$0xff]  ;;  %v864_v51 = vld [vmem:[%s3582_s21 + $0x120] sm:$0xff] }
  0x38   : > { %936 = vmatpush.msra.mxu0 %v835_v25  ;;  %974 = vmatpush.msra.mxu2 %v869_v31  ;;  %v882_v48 = vld [vmem:[%s3582_s21 + $0x1b0] sm:$0xff]  ;;  %v881_v52 = vld [vmem:[%s3582_s21 + $0x1a8] sm:$0xff]  ;;  %v828_v53 = vld [vmem:[%s3582_s21] sm:$0xff] }
  0x39   : > { %956 = vmatpush.msra.mxu1 %v851_v26  ;;  %994 = vmatpush.msra.mxu3 %v885_v36  ;;  %v844_v54 = vld [vmem:[%s3582_s21 + $0x80] sm:$0xff]  ;;  %v907_v55 = vld [vmem:[%s3582_s21 + $0x278] sm:$0xff]  ;;  %v906_v59 = vld [vmem:[%s3582_s21 + $0x270] sm:$0xff] }
  0x3a   : > { %937 = vmatpush.msra.mxu0 %v834_v29  ;;  %975 = vmatpush.msra.mxu2 %v868_v35  ;;  %v923_v56 = vld [vmem:[%s3582_s21 + $0x2f8] sm:$0xff]  ;;  %v880_v58 = vld [vmem:[%s3582_s21 + $0x1a0] sm:$0xff]  ;;  %v922_v60 = vld [vmem:[%s3582_s21 + $0x2f0] sm:$0xff] }
  0x3b   : > { %957 = vmatpush.msra.mxu1 %v850_v30  ;;  %995 = vmatpush.msra.mxu3 %v884_v40  ;;  %v863_v57 = vld [vmem:[%s3582_s21 + $0x118] sm:$0xff]  ;;  %v862_v61 = vld [vmem:[%s3582_s21 + $0x110] sm:$0xff]  ;;  %v905_v63 = vld [vmem:[%s3582_s21 + $0x268] sm:$0xff] }
  0x3c   : > { %938 = vmatpush.msra.mxu0 %v833_v33  ;;  %976 = vmatpush.msra.mxu2 %v867_v39  ;;  %v879_v62 = vld [vmem:[%s3582_s21 + $0x198] sm:$0xff]  ;;  %v921_v0 = vld [vmem:[%s3582_s21 + $0x2e8] sm:$0xff]  ;;  %v878_v2 = vld [vmem:[%s3582_s21 + $0x190] sm:$0xff] }
  0x3d   : > { %958 = vmatpush.msra.mxu1 %v849_v34  ;;  %996 = vmatpush.msra.mxu3 %v883_v44  ;;  %v861_v1 = vld [vmem:[%s3582_s21 + $0x108] sm:$0xff]  ;;  %v904_v3 = vld [vmem:[%s3582_s21 + $0x260] sm:$0xff]  ;;  %v903_v7 = vld [vmem:[%s3582_s21 + $0x258] sm:$0xff] }
  0x3e   : > { %939 = vmatpush.msra.mxu0 %v832_v37  ;;  %977 = vmatpush.msra.mxu2 %v866_v43  ;;  %v920_v4 = vld [vmem:[%s3582_s21 + $0x2e0] sm:$0xff]  ;;  %v877_v6 = vld [vmem:[%s3582_s21 + $0x188] sm:$0xff]  ;;  %v919_v8 = vld [vmem:[%s3582_s21 + $0x2d8] sm:$0xff] }
  0x3f   : > { %959 = vmatpush.msra.mxu1 %v848_v38  ;;  %997 = vmatpush.msra.mxu3 %v882_v48  ;;  %v860_v5 = vld [vmem:[%s3582_s21 + $0x100] sm:$0xff]  ;;  %v824_v9 = vld [vmem:[%s3583_s20 + $0x10] sm:$0xff]  ;;  %v825_v14 = vld [vmem:[%s3583_s20 + $0x18] sm:$0xff] }
  0x40   : > { %940 = vmatpush.msra.mxu0 %v831_v41  ;;  %978 = vmatpush.msra.mxu2 %v865_v47  ;;  %v876_v10 = vld [vmem:[%s3582_s21 + $0x180] sm:$0xff]  ;;  %v902_v11 = vld [vmem:[%s3582_s21 + $0x250] sm:$0xff]  ;;  %v901_v15 = vld [vmem:[%s3582_s21 + $0x248] sm:$0xff]  ;;  %v2652_v41 = vmov 0.0  }
  0x41   : > { %960 = vmatpush.msra.mxu1 %v847_v42  ;;  %998 = vmatpush.msra.mxu3 %v881_v52  ;;  %v918_v12 = vld [vmem:[%s3582_s21 + $0x2d0] sm:$0xff]  ;;  %v822_v13 = vld [vmem:[%s3583_s20] sm:$0xff]  ;;  %v917_v16 = vld [vmem:[%s3582_s21 + $0x2c8] sm:$0xff]  ;;  %1052 = vst.msk [vmem:[#allocation2] sm:$0xff] %vm1051_vm0, %v2652_v41 }
  0x42   : > { %941 = vmatpush.msra.mxu0 %v830_v45  ;;  %979 = vmatpush.msra.mxu2 %v864_v51  ;;  %v823_v17 = vld [vmem:[%s3583_s20 + $0x8] sm:$0xff]  ;;  %v900_v18 = vld [vmem:[%s3582_s21 + $0x240] sm:$0xff]  ;;  %v899_v20 = vld [vmem:[%s3582_s21 + $0x238] sm:$0xff]  ;;  %1053 = vst.msk [vmem:[#allocation2 + $0x8] sm:$0xff] %vm1051_vm0, %v2652_v41 }
  0x43   : > { %961 = vmatpush.msra.mxu1 %v846_v46  ;;  %999 = vmatpush.msra.mxu3 %v880_v58  ;;  %v916_v19 = vld [vmem:[%s3582_s21 + $0x2c0] sm:$0xff]  ;;  %v915_v21 = vld [vmem:[%s3582_s21 + $0x2b8] sm:$0xff]  ;;  %v898_v22 = vld [vmem:[%s3582_s21 + $0x230] sm:$0xff]  ;;  %1068 = vst [vmem:[#allocation4] sm:$0x3] %v2652_v41 }
  0x44   : > { %942 = vmatpush.msra.mxu0 %v829_v49  ;;  %980 = vmatpush.msra.mxu2 %v863_v57  ;;  %v914_v23 = vld [vmem:[%s3582_s21 + $0x2b0] sm:$0xff]  ;;  %v897_v24 = vld [vmem:[%s3582_s21 + $0x228] sm:$0xff]  ;;  %v896_v26 = vld [vmem:[%s3582_s21 + $0x220] sm:$0xff] }
  0x45   : > { %962 = vmatpush.msra.mxu1 %v845_v50  ;;  %1000 = vmatpush.msra.mxu3 %v879_v62  ;;  %v913_v25 = vld [vmem:[%s3582_s21 + $0x2a8] sm:$0xff]  ;;  %v912_v27 = vld [vmem:[%s3582_s21 + $0x2a0] sm:$0xff]  ;;  %v895_v28 = vld [vmem:[%s3582_s21 + $0x218] sm:$0xff] }
  0x46   : > { %943 = vmatpush.msra.mxu0 %v828_v53  ;;  %981 = vmatpush.msra.mxu2 %v862_v61  ;;  %v911_v29 = vld [vmem:[%s3582_s21 + $0x298] sm:$0xff]  ;;  %v894_v30 = vld [vmem:[%s3582_s21 + $0x210] sm:$0xff]  ;;  %v893_v32 = vld [vmem:[%s3582_s21 + $0x208] sm:$0xff] }
  0x47   : > { %963 = vmatpush.msra.mxu1 %v844_v54  ;;  %1001 = vmatpush.msra.mxu3 %v878_v2  ;;  %v910_v31 = vld [vmem:[%s3582_s21 + $0x290] sm:$0xff]  ;;  %v909_v33 = vld [vmem:[%s3582_s21 + $0x288] sm:$0xff]  ;;  %v892_v34 = vld [vmem:[%s3582_s21 + $0x200] sm:$0xff] }
  0x48   : > { %1008 = vmatpush.msrb.mxu0 %v907_v55  ;;  %982 = vmatpush.msra.mxu2 %v861_v1  ;;  %v908_v35 = vld [vmem:[%s3582_s21 + $0x280] sm:$0xff]  ;;  %v827_v37 = vld [vmem:[%s3583_s20 + $0x28] sm:$0xff] }
  0x49   : > { %1028 = vmatpush.msrb.mxu1 %v923_v56  ;;  %1002 = vmatpush.msra.mxu3 %v877_v6  ;;  %v826_v36 = vld [vmem:[%s3583_s20 + $0x20] sm:$0xff] }
  0x4a   : > { %1009 = vmatpush.msrb.mxu0 %v906_v59  ;;  %983 = vmatpush.msra.mxu2 %v860_v5  ;;  %v1048_v38 = vld [vmem:[%s3584_s3] sm:$0x1f] }
  0x4b   : > { %1029 = vmatpush.msrb.mxu1 %v922_v60  ;;  %984 = vmatmul.f32.vlgmr.msra.gmra.mxu2 %v824_v9  ;;  %v1049_v39 = vld [vmem:[%s3585_s29] sm:$0x1]  ;;  %v1057_v54 = vrot.slane %v1048_v38, 1  ;;  %v1063_v55 = vrot.slane %v1048_v38, 5 }
  0x4c   : > { %1010 = vmatpush.msrb.mxu0 %v905_v63  ;;  %1003 = vmatpush.msra.mxu3 %v876_v10  ;;  %v1050_v40 = vadd.f32 %v1049_v39, %v1048_v38  ;;  %v2551_v42 = vld [vmem:[%s3586_s30] ss:$0 sm:$0xff] }
  0x4d   : > { %1030 = vmatpush.msrb.mxu1 %v921_v0  ;;  %944 = vmatmul.f32.vlgmr.msra.gmra.mxu0 %v822_v13 }
  0x4e   : > { %1011 = vmatpush.msrb.mxu0 %v904_v3  ;;  %1004 = vmatmul.f32.vlgmr.msra.gmra.mxu3 %v825_v14  ;;  %1055 = vst.msk [vmem:[#allocation2] sm:$0x1] %vm1054_vm1, %v1050_v40 }
  0x4f   : > { %1031 = vmatpush.msrb.mxu1 %v920_v4  ;;  %1062 = vst.msk [vmem:[#allocation2 + $0x8] sm:$0x1] %vm1054_vm1, %v1050_v40 }
  0x50   : > { %1012 = vmatpush.msrb.mxu0 %v903_v7  ;;  %964 = vmatmul.f32.vlgmr.msra.gmra.mxu1 %v823_v17 }
  0x51   : > { %1032 = vmatpush.msrb.mxu1 %v919_v8 }
  0x52   : > { %1013 = vmatpush.msrb.mxu0 %v902_v11 }
  0x53   : > { %1033 = vmatpush.msrb.mxu1 %v918_v12 }
  0x54   : > { %1014 = vmatpush.msrb.mxu0 %v901_v15 }
  0x55   : > { %1034 = vmatpush.msrb.mxu1 %v917_v16 }
  0x56   : > { %1015 = vmatpush.msrb.mxu0 %v900_v18 }
  0x57   : > { %1035 = vmatpush.msrb.mxu1 %v916_v19 }
  0x58   : > { %1016 = vmatpush.msrb.mxu0 %v899_v20 }
  0x59   : > { %1036 = vmatpush.msrb.mxu1 %v915_v21 }
  0x5a   : > { %1017 = vmatpush.msrb.mxu0 %v898_v22 }
  0x5b   : > { %1037 = vmatpush.msrb.mxu1 %v914_v23 }
  0x5c   : > { %1018 = vmatpush.msrb.mxu0 %v897_v24 }
  0x5d   : > { %1038 = vmatpush.msrb.mxu1 %v913_v25 }
  0x5e   : > { %1019 = vmatpush.msrb.mxu0 %v896_v26 }
  0x5f   : > { %1039 = vmatpush.msrb.mxu1 %v912_v27 }
  0x60   : > { %1020 = vmatpush.msrb.mxu0 %v895_v28 }
  0x61   : > { %1040 = vmatpush.msrb.mxu1 %v911_v29 }
  0x62   : > { %1021 = vmatpush.msrb.mxu0 %v894_v30 }
  0x63   : > { %1041 = vmatpush.msrb.mxu1 %v910_v31 }
  0x64   : > { %1022 = vmatpush.msrb.mxu0 %v893_v32 }
  0x65   : > { %1042 = vmatpush.msrb.mxu1 %v909_v33 }
  0x66   : > { %1023 = vmatpush.msrb.mxu0 %v892_v34 }
  0x67   : > { %1043 = vmatpush.msrb.mxu1 %v908_v35  ;;  %1024 = vmatmul.f32.vlgmr.msrb.gmra.mxu0 %v826_v36 }
  0x68   : > { %1044 = vmatmul.f32.vlgmr.msrb.gmra.mxu1 %v827_v37 }
  0xca   : > { %v945_v43 = vpop.f32.mrf.mxu0 }
  0xcb   : > { %v946_v44 = vadd.f32 %v2551_v42, %v945_v43 }
  0xcd   : > { %v965_v45 = vpop.f32.mrf.mxu1 }
  0xce   : > { %v966_v46 = vadd.f32 %v965_v45, %v946_v44  ;;  %v985_v47 = vpop.f32.mrf.mxu2 }
  0xd0   : > { %v986_v48 = vadd.f32 %v985_v47, %v966_v46 }
  0xd1   : > { %v1005_v49 = vpop.f32.mrf.mxu3 }
  0xd2   : > { %v1006_v50 = vadd.f32 %v1005_v49, %v986_v48 }
  0xe4   : > { %v1025_v51 = vpop.f32.mrf.mxu0 }
  0xe5   : > { %v1045_v52 = vpop.f32.mrf.mxu1  ;;  %v1026_v53 = vadd.f32 %v1025_v51, %v1006_v50 }
  0xe7   : > { %v1046_v56 = vadd.f32 %v1045_v52, %v1026_v53 }
  0xe9   : > { %v1059_v57 = vadd.f32 %v1057_v54, %v1046_v56  ;;  %v1065_v58 = vadd.f32 %v1063_v55, %v1046_v56 }
  0xeb   : > { %1061 = vst.msk [vmem:[#allocation2 + $0x1] sm:$0xf] %vm1060_vm2, %v1059_v57 }
  0xec   : > { %1067 = vst.msk [vmem:[#allocation2 + $0x5] sm:$0xf0] %vm1066_vm3, %v1065_v58 }
  0xed PF: > { %vm1073_vm4 = vcmask 523264   ;;  %v2653_v61 = vmov 64.0   ;;  %v1149_v9 = vld [vmem:[%s2799_s24 + $0x70] sm:$0xff]  ;;  %v1150_v10 = vld [vmem:[%s2799_s24 + $0x78] sm:$0xff]  ;;  %v1147_v11 = vld [vmem:[%s2799_s24 + $0x60] sm:$0xff]  ;;  %s3587_s1 = sld [smem:[#allocation13_spill]]  ;;  %s3589_s5 = scalar_lea.vmem %s3545_s6, %s2784_s26  ;;  %v1217_v52 = vlaneseq }
  0xee   : > { %2559 = vrcp.f32 %v2653_v61  ;;  %1171 = vmatpush.msra.mxu0 %v1149_v9  ;;  %1194 = vmatpush.msra.mxu2 %v1150_v10  ;;  %v1148_v12 = vld [vmem:[%s2799_s24 + $0x68] sm:$0xff]  ;;  %v1145_v13 = vld [vmem:[%s2799_s24 + $0x50] sm:$0xff]  ;;  %v1146_v14 = vld [vmem:[%s2799_s24 + $0x58] sm:$0xff]  ;;  %s2654_s29 = smov 64   ;;  %s2656_s0 = smov 32   ;;  %vm1223_vm9 = vcmask 130048  }
  0xef   : > { %2511 = vmatpush.msra.mxu3 %v1150_v10  ;;  %v1143_v15 = vld [vmem:[%s2799_s24 + $0x40] sm:$0xff]  ;;  %v1144_v16 = vld [vmem:[%s2799_s24 + $0x48] sm:$0xff]  ;;  %v1141_v17 = vld [vmem:[%s2799_s24 + $0x30] sm:$0xff]  ;;  %v3229_v53 = vand.u32 127, %v1217_v52  ;;  %vm1250_vm11 = vcmask 64512   ;;  %s2657_s17 = smov 48  }
  0xf0   : > { %1172 = vmatpush.msra.mxu0 %v1147_v11  ;;  %1195 = vmatpush.msra.mxu2 %v1148_v12  ;;  %v1142_v18 = vld [vmem:[%s2799_s24 + $0x38] sm:$0xff]  ;;  %v1139_v19 = vld [vmem:[%s2799_s24 + $0x20] sm:$0xff]  ;;  %v1140_v20 = vld [vmem:[%s2799_s24 + $0x28] sm:$0xff]  ;;  %s2658_s30 = smov 96   ;;  %s2660_s7 = smov 80  }
  0xf1   : > { %2512 = vmatpush.msra.mxu3 %v1148_v12  ;;  %v1137_v21 = vld [vmem:[%s2799_s24 + $0x10] sm:$0xff]  ;;  %v1138_v22 = vld [vmem:[%s2799_s24 + $0x18] sm:$0xff]  ;;  %v1135_v23 = vld [vmem:[%s2799_s24] sm:$0xff]  ;;  %vm1219_vm10 = vcmp.lt.s32.totalorder %v3229_v53, 5  ;;  %p2500_p5 = scmp.ne.s32.totalorder %s2778_s25, 1 }
  0xf2   : > { %v3158_v59 = vld [vmem:[#allocation2] sm:$0xff]  ;;  %1173 = vmatpush.msra.mxu0 %v1145_v13  ;;  %1196 = vmatpush.msra.mxu2 %v1146_v14  ;;  %v1136_v24 = vld [vmem:[%s2799_s24 + $0x8] sm:$0xff]  ;;  %s2659_s24 = smov 16  }
  0xf3   : > { %v1074_v60 = vsel %vm1073_vm4, %v3158_v59, 0.0  ;;  %2513 = vmatpush.msra.mxu3 %v1146_v14  ;;  %s3588_s22 = scalar_lea.vmem %s3587_s1, %s2784_s26  ;;  %v3196_v37 = vld [vmem:[%s3589_s5] ss:$0 sm:$0xff]  ;;  %v3218_v47 = vld [vmem:[#allocation2 + $0x8] sm:$0xff] }
  0xf4   : > { %1075 = vadd.xlane.f32.xlu0 %v1074_v60  ;;  %v2560_v62 = vpop.eup %2559  ;;  %1174 = vmatpush.msra.mxu0 %v1143_v15  ;;  %v3189_v34 = vld [vmem:[%s3588_s22] ss:$0 sm:$0xff]  ;;  %v1077_v48 = vsel %vm1073_vm4, %v3218_v47, 0.0  ;;  %s3590_s22 = scalar_lea.vmem %s3549_s10, %s2784_s26 }
  0xf5   : > { %v1081_v63 = vmul.f32 64.0, %v2560_v62  ;;  %vm1085_vm5 = vweird.f32 %v2560_v62  ;;  %1197 = vmatpush.msra.mxu2 %v1144_v16  ;;  %2514 = vmatpush.msra.mxu3 %v1144_v16  ;;  %v3203_v40 = vld [vmem:[%s2804_s2] sm:$0x3]  ;;  %s2655_s2 = smov 112  }
  0xf6   : > { %1175 = vmatpush.msra.mxu0 %v1141_v17  ;;  %v1153_v41 = vperm.slane %v3203_v40, 0  ;;  %v1154_v44 = vperm.slane %v3203_v40, 1 }
  0xf7   : > { %v1082_v0 = vsub.f32 1.0, %v1081_v63  ;;  %1198 = vmatpush.msra.mxu2 %v1142_v18  ;;  %2515 = vmatpush.msra.mxu3 %v1142_v18 }
  0xf8   : > { %1176 = vmatpush.msra.mxu0 %v1139_v19 }
  0xf9   : > { %v1083_v1 = vmul.f32 %v2560_v62, %v1082_v0  ;;  %1199 = vmatpush.msra.mxu2 %v1140_v20  ;;  %2516 = vmatpush.msra.mxu3 %v1140_v20 }
  0xfa   : > { %1177 = vmatpush.msra.mxu0 %v1137_v21 }
  0xfb   : > { %v1084_v2 = vadd.f32 %v2560_v62, %v1083_v1  ;;  %1200 = vmatpush.msra.mxu2 %v1138_v22  ;;  %2517 = vmatpush.msra.mxu3 %v1138_v22  ;;  %v1212_v22 = vld [vmem:[%s2814_s4 + $0x18] sm:$0xff] }
  0xfc   : > { %1178 = vmatpush.msra.mxu0 %v1135_v23  ;;  %v1211_v23 = vld [vmem:[%s2814_s4 + $0x10] sm:$0xff] }
  0xfd   : > { %v3162_v3 = vsel %vm1085_vm5, %v2560_v62, %v1084_v2  ;;  %1201 = vmatpush.msra.mxu2 %v1136_v24  ;;  %2518 = vmatpush.msra.mxu3 %v1136_v24 }
 0x167   : > { %v1076_v4 = vpop.xlane.xlu0 %1075 }
 0x168   : > { %v1087_v5 = vmul.f32 %v3162_v3, %v1076_v4 }
 0x16a   : > { %v1089_v6 = vsub.f32 %v3158_v59, %v1087_v5 }
 0x16c   : > { %v1091_v7 = vmul.f32 %v1089_v6, %v1089_v6 }
 0x16e   : > { %v1093_v8 = vsel %vm1073_vm4, %v1091_v7, 0.0 }
 0x16f   : > { %1094 = vadd.xlane.f32.xlu0 %v1093_v8 }
 0x1e2   : > { %v1095_v25 = vpop.xlane.xlu0 %1094 }
 0x1e3   : > { %v1099_v26 = vmul.f32 %v1095_v25, %v3162_v3 }
 0x1e5   : > { %v1101_v27 = vadd.f32 1e-06, %v1099_v26 }
 0x1e7   : > { %2561 = vrsqrt.f32 %v1101_v27  ;;  %vm1109_vm7 = vweird.f32 %v1101_v27 }
 0x1ed   : > { %v2562_v28 = vpop.eup %2561 }
 0x1ee   : > { %v1104_v29 = vmul.f32 %v2562_v28, %v1101_v27  ;;  %vm1110_vm6 = vweird.f32 %v2562_v28 }
 0x1ef   : > { %vm1111_vm8 = vmor %vm1109_vm7, %vm1110_vm6 }
 0x1f0   : > { %v1105_v30 = vmul.f32 %v2562_v28, %v1104_v29 }
 0x1f2   : > { %v1106_v31 = vmul.f32 0.5, %v1105_v30 }
 0x1f4   : > { %v1107_v32 = vsub.f32 1.5, %v1106_v31 }
 0x1f6   : > { %v1108_v33 = vmul.f32 %v2562_v28, %v1107_v32 }
 0x1f8   : > { %v1112_v35 = vsel %vm1111_vm8, %v2562_v28, %v1108_v33 }
 0x1f9   : > { %v1123_v36 = vmul.f32 %v1112_v35, %v1089_v6  ;;  %v1213_v35 = vld [vmem:[%s2814_s4 + $0x20] sm:$0xff] }
 0x1fb   : > { %v1128_v38 = vmul.f32 %v3189_v34, %v1123_v36 }
 0x1fd   : > { %v1133_v39 = vadd.f32 %v3196_v37, %v1128_v38 }
 0x1ff   : > { %2460 = vmatmul.msk.f32.vlgmr.msra.gmra.mxu0 %vm1073_vm4, %v1133_v39  ;;  %2462 = vmatmul.msk.f32.vlgmr.msra.gmra.mxu2 %vm1073_vm4, %v1133_v39 }
 0x27c   : > { %v1180_v42 = vpop.f32.mrf.mxu0 }
 0x27d   : > { %v3208_v43 = vadd.f32 %v1180_v42, %v1153_v41 }
 0x27f   : > { %1221 = vrot.lane.b32.xlu1 %v3208_v43, %s2654_s29 }
 0x282   : > { %v1203_v45 = vpop.f32.mrf.mxu2 }
 0x283   : > { %v3215_v46 = vadd.f32 %v1203_v45, %v1154_v44 }
 0x285   : > { %1280 = vmatpush.msrb.mxu3 %v3215_v46 }
 0x2a9   : > { %1078 = vadd.xlane.f32.xlu1 %v1077_v48 }
 0x2c2   : > { %1327 = vrot.lane.b32.xlu1 %v3215_v46, %s2655_s2 }
 0x2ca   : > { %1401 = vrot.lane.b32.xlu1 %v3208_v43, %s2656_s0 }
 0x2f1   : > { %v1222_v49 = vpop.permute.xlu1 %1221 }
 0x2f2   : > { %2464 = vmatpush.xpose.msk.msrb.mxu2 %vm1223_vm9, %v1222_v49  ;;  %v3277_v49 = vld [vmem:[%s2814_s4 + $0x8] sm:$0xff] }
 0x2f5   : > { %2465 = vmatmul.msk.f32.vlgmr.msrb.gmra.mxu2 %vm1223_vm9, %v3208_v43 }
 0x31c   : > { %v1079_v50 = vpop.xlane.xlu1 %1078 }
 0x31d   : > { %v1088_v54 = vmul.f32 %v3162_v3, %v1079_v50  ;;  %v3280_v50 = vld [vmem:[%s2814_s4] sm:$0xff] }
 0x31f   : > { %v1090_v57 = vsub.f32 %v3218_v47, %v1088_v54 }
 0x321   : > { %v1092_v61 = vmul.f32 %v1090_v57, %v1090_v57 }
 0x323   : > { %v1096_v62 = vsel %vm1073_vm4, %v1092_v61, 0.0 }
 0x334   : > { %v1328_v51 = vpop.permute.xlu1 %1327 }
 0x335   : > { %1348 = vmatpush.msra.mxu2 %v1328_v51 }
 0x337   : > { %1393 = vmatpush.msrb.mxu2 %v3277_v49 }
 0x339   : > { %1394 = vmatpush.msrb.mxu2 %v3280_v50 }
 0x33c   : > { %v1402_v25 = vpop.permute.xlu1 %1401 }
 0x378   : > { %v1245_v55 = vpop.f32.mrf.mxu2 }
 0x379   : > { %v1248_v56 = vmul.f32 0.25, %v1245_v55 }
 0x37b   : > { %v1249_v58 = vsel %vm1219_vm10, %v1248_v56, -1e+30 }
 0x37c   : > { %v1251_v60 = vsel %vm1250_vm11, %v1249_v58, -inf }
 0x37d   : > { %1252 = vmax.xlane.f32.xlu2 %v1251_v60 }
 0x385   : > { %1097 = vadd.xlane.f32.xlu2 %v1096_v62 }
 0x39d   : > { %1287 = vrot.lane.b32.xlu2 %v3208_v43, %s2657_s17 }
 0x3f0   : > { %v1253_v63 = vpop.xlane.xlu2 %1252 }
 0x3f1   : > { %v1254_v0 = vsub.f32 %v1249_v58, %v1253_v63 }
 0x3f3   : > { %v1255_v1 = vmul.f32 1.442695, %v1254_v0 }
 0x3f5   : > { %2563 = vpow2.f32 %v1255_v1 }
 0x3f8   : > { %v1098_v2 = vpop.xlane.xlu2 %1097 }
 0x3f9   : > { %v1100_v4 = vmul.f32 %v1098_v2, %v3162_v3 }
 0x3fb   : > { %v2564_v5 = vpop.eup %2563  ;;  %v1102_v6 = vadd.f32 1e-06, %v1100_v4 }
 0x3fc   : > { %v1257_v7 = vsel %vm1250_vm11, %v2564_v5, 0.0 }
 0x3fd   : > { %2565 = vrsqrt.f32 %v1102_v6  ;;  %1258 = vadd.xlane.f32.xlu0 %v1257_v7  ;;  %vm1119_vm12 = vweird.f32 %v1102_v6 }
 0x400   : > { %v1288_v18 = vpop.permute.xlu2 %1287 }
 0x403   : > { %v2566_v8 = vpop.eup %2565 }
 0x404   : > { %v1114_v9 = vmul.f32 %v2566_v8, %v1102_v6  ;;  %vm1120_vm13 = vweird.f32 %v2566_v8 }
 0x405   : > { %vm1121_vm14 = vmor %vm1119_vm12, %vm1120_vm13 }
 0x406   : > { %v1115_v10 = vmul.f32 %v2566_v8, %v1114_v9 }
 0x408   : > { %v1116_v11 = vmul.f32 0.5, %v1115_v10 }
 0x40a   : > { %v1117_v12 = vsub.f32 1.5, %v1116_v11 }
 0x40c   : > { %v1118_v13 = vmul.f32 %v2566_v8, %v1117_v12 }
 0x40e   : > { %v1122_v14 = vsel %vm1121_vm14, %v2566_v8, %v1118_v13 }
 0x40f   : > { %v1124_v15 = vmul.f32 %v1122_v14, %v1090_v57 }
 0x411   : > { %1285 = vrot.lane.b32.xlu0 %v3208_v43, %s2655_s2  ;;  %v1129_v16 = vmul.f32 %v3189_v34, %v1124_v15  ;;  %v1214_v34 = vld [vmem:[%s2814_s4 + $0x28] sm:$0xff] }
 0x412   : > { %1483 = vmatpush.msra.mxu1 %v1214_v34 }
 0x413   : > { %v1134_v17 = vadd.f32 %v3196_v37, %v1129_v16 }
 0x414   : > { %1484 = vmatpush.msra.mxu1 %v1213_v35 }
 0x415   : > { %2461 = vmatmul.msk.f32.gmra.mxu0 %vm1073_vm4, %v1134_v17  ;;  %2463 = vmatmul.msk.f32.vlgmr.msra.gmra.mxu3 %vm1073_vm4, %v1134_v17 }
 0x416   : > { %2467 = vmatpush.xpose.msk.msra.mxu3 %vm1223_vm9, %v1288_v18 }
 0x470   : > { %v1259_v19 = vpop.xlane.xlu0 %1258 }
 0x471   : > { %2567 = vrcp.f32 %v1259_v19 }
 0x477   : > { %v2568_v20 = vpop.eup %2567 }
 0x478   : > { %v1261_v21 = vmul.f32 %v2568_v20, %v2564_v5 }
 0x47a   : > { %2466 = vmatmul.msk.f32.vlgmr.msrb.gmra.mxu3 %vm1250_vm11, %v1261_v21 }
 0x47b   : > { %1370 = vmatpush.msrb.mxu3 %v1212_v22 }
 0x47d   : > { %1371 = vmatpush.msrb.mxu3 %v1211_v23 }
 0x483   : > { %v1286_v24 = vpop.permute.xlu0 %1285 }
 0x484   : > { %2468 = vmatmul.msk.f32.vlgmr.msra.gmra.mxu3 %vm1223_vm9, %v1286_v24 }
 0x485   : > { %2472 = vmatpush.xpose.msk.msra.mxu3 %vm1223_vm9, %v1402_v25 }
 0x492   : > { %v1183_v32 = vpop.f32.mrf.mxu0 }
 0x493   : > { %v3263_v33 = vadd.f32 %v1183_v32, %v1153_v41 }
 0x498   : > { %v3254_v26 = vpop.f32.mrf.mxu3 }
 0x499   : > { %v3315_v19 = vadd.f32 %v3254_v26, %v1154_v44 }
 0x4fd   : > { %v1282_v27 = vpop.f32.mrf.mxu3 }
 0x507   : > { %v1310_v28 = vpop.f32.mrf.mxu3 }
 0x508   : > { %v1313_v29 = vmul.f32 0.25, %v1310_v28 }
 0x50a   : > { %v1314_v30 = vsel %vm1219_vm10, %v1313_v29, -1e+30 }
 0x50b   : > { %v1315_v31 = vsel %vm1250_vm11, %v1314_v30, -inf }
 0x50c   : > { %1316 = vmax.xlane.f32.xlu2 %v1315_v31 }
 0x524   : > { %1399 = vrot.lane.b32.xlu2 %v3208_v43, %s2658_s30 }
 0x52c   : > { %1583 = vrot.lane.b32.xlu2 %v3263_v33, %s2654_s29 }
 0x534   : > { %1492 = vrot.lane.b32.xlu2 %v3208_v43, %s2659_s24 }
 0x57f   : > { %v1317_v36 = vpop.xlane.xlu2 %1316 }
 0x580   : > { %v1318_v37 = vsub.f32 %v1314_v30, %v1317_v36 }
 0x582   : > { %v1319_v38 = vmul.f32 1.442695, %v1318_v37 }
 0x584   : > { %2569 = vpow2.f32 %v1319_v38 }
 0x587   : > { %v1400_v39 = vpop.permute.xlu2 %1399 }
 0x58a   : > { %v2570_v41 = vpop.eup %2569 }
 0x58b   : > { %v1321_v42 = vsel %vm1250_vm11, %v2570_v41, 0.0 }
 0x58c   : > { %1322 = vadd.xlane.f32.xlu0 %v1321_v42 }
 0x58f   : > { %v1584_v45 = vpop.permute.xlu2 %1583 }
 0x590   : > { %2480 = vmatpush.xpose.msk.msrb.mxu0 %vm1223_vm9, %v1584_v45 }
 0x593   : > { %2481 = vmatmul.msk.f32.vlgmr.msrb.gmra.mxu0 %vm1223_vm9, %v3263_v33 }
 0x594   : > { %1730 = vmatpush.msra.mxu0 %v1212_v22 }
 0x596   : > { %1731 = vmatpush.msra.mxu0 %v1211_v23 }
 0x597   : > { %v1493_v48 = vpop.permute.xlu2 %1492 }
 0x598   : > { %1843 = vmatpush.msrb.mxu0 %v1214_v34  ;;  %2476 = vmatpush.xpose.msk.msrb.mxu1 %vm1223_vm9, %v1493_v48 }
 0x59a   : > { %1844 = vmatpush.msrb.mxu0 %v1213_v35 }
 0x5ff   : > { %v1323_v51 = vpop.xlane.xlu0 %1322 }
 0x600   : > { %2571 = vrcp.f32 %v1323_v51 }
 0x606   : > { %v2572_v52 = vpop.eup %2571 }
 0x607   : > { %v1325_v54 = vmul.f32 %v2572_v52, %v2570_v41  ;;  %v3337_v41 = vld [vmem:[%s2814_s4 + $0x38] sm:$0xff] }
 0x609   : > { %2469 = vmatmul.msk.f32.vlgmr.msra.gmra.mxu2 %vm1250_vm11, %v1325_v54 }
 0x610   : > { %v1606_v55 = vpop.f32.mrf.mxu0 }
 0x611   : > { %v1609_v56 = vmul.f32 0.25, %v1606_v55  ;;  %2471 = vmatmul.msk.f32.vlgmr.msrb.gmra.mxu2 %vm1223_vm9, %v1282_v27  ;;  %v3350_v55 = vld [vmem:[%s2814_s4 + $0x30] sm:$0xff] }
 0x613   : > { %v1610_v57 = vsel %vm1219_vm10, %v1609_v56, -1e+30 }
 0x614   : > { %v1611_v58 = vsel %vm1250_vm11, %v1610_v57, -inf }
 0x615   : > { %1612 = vmax.xlane.f32.xlu2 %v1611_v58 }
 0x62d   : > { %1647 = vrot.lane.b32.xlu2 %v3263_v33, %s2657_s17 }
 0x688   : > { %v1613_v8 = vpop.xlane.xlu2 %1612 }
 0x689   : > { %v1614_v11 = vsub.f32 %v1610_v57, %v1613_v8 }
 0x68b   : > { %v1615_v12 = vmul.f32 1.442695, %v1614_v11 }
 0x68c   : > { %v1350_v60 = vpop.f32.mrf.mxu2 }
 0x68d   : > { %2470 = vmatmul.msk.f32.vlgmr.msrb.gmra.mxu3 %vm1223_vm9, %v1350_v60 }
 0x690   : > { %v1648_v10 = vpop.permute.xlu2 %1647 }
 0x695   : > { %2473 = vmatmul.msk.f32.vlgmr.msra.gmra.mxu3 %vm1223_vm9, %v1400_v39 }
 0x710   : > { %v1373_v61 = vpop.f32.mrf.mxu3 }
 0x718   : > { %v1424_v62 = vpop.f32.mrf.mxu3 }
 0x719   : > { %v1427_v63 = vmul.f32 0.25, %v1424_v62 }
 0x71b   : > { %v1428_v0 = vsel %vm1219_vm10, %v1427_v63, -1e+30 }
 0x71c   : > { %v1429_v1 = vsel %vm1250_vm11, %v1428_v0, -inf }
 0x71d   : > { %1430 = vmax.xlane.f32.xlu1 %v1429_v1 }
 0x736   : > { %1531 = vrot.lane.b32.xlu1 %v3215_v46, %s2660_s7 }
 0x73e   : > { %1761 = vrot.lane.b32.xlu1 %v3263_v33, %s2656_s0  ;;  %s3593_s0 = sld [smem:[#allocation18_spill]] (!%p2500_p5) }
 0x790   : > { %v1431_v2 = vpop.xlane.xlu1 %1430 }
 0x791   : > { %v1432_v4 = vsub.f32 %v1428_v0, %v1431_v2 }
 0x793   : > { %v1433_v5 = vmul.f32 1.442695, %v1432_v4 }
 0x795   : > { %2573 = vpow2.f32 %v1433_v5 }
 0x796   : > { %2575 = vpow2.f32 %v1615_v12 }
 0x79b   : > { %v2574_v6 = vpop.eup %2573 }
 0x79c   : > { %v1435_v7 = vsel %vm1250_vm11, %v2574_v6, 0.0  ;;  %v2576_v13 = vpop.eup %2575 }
 0x79d   : > { %1436 = vadd.xlane.f32.xlu0 %v1435_v7  ;;  %v1617_v14 = vsel %vm1250_vm11, %v2576_v13, 0.0 }
 0x7a8   : > { %v1532_v9 = vpop.permute.xlu1 %1531 }
 0x7a9   : > { %1552 = vmatpush.msrb.mxu3 %v1532_v9 }
 0x7ab   : > { %2483 = vmatpush.xpose.msk.msra.mxu3 %vm1223_vm9, %v1648_v10 }
 0x7b0   : > { %v1762_v30 = vpop.permute.xlu1 %1761 }
 0x7b1   : > { %1440 = vrot.lane.b32.xlu0 %v3215_v46, %s2658_s30 }
 0x7b9   : > { %1490 = vrot.lane.b32.xlu0 %v3208_v43, %s2660_s7  ;;  %v1396_v43 = vpop.f32.mrf.mxu2 }
 0x7ba   : > { %v1397_v40 = vadd.f32 %v1396_v43, %v1373_v61 }
 0x7e3   : > { %1618 = vadd.xlane.f32.xlu0 %v1617_v14 }
 0x7f7   : > { %1645 = vrot.lane.b32.xlu0 %v3263_v33, %s2655_s2 }
 0x7ff   : > { %1850 = vrot.lane.b32.xlu0 %v3263_v33, %s2660_s7 }
 0x810   : > { %v1437_v15 = vpop.xlane.xlu0 %1436 }
 0x811   : > { %2577 = vrcp.f32 %v1437_v15 }
 0x817   : > { %v2578_v16 = vpop.eup %2577 }
 0x818   : > { %v1439_v46 = vmul.f32 %v2578_v16, %v2574_v6 }
 0x823   : > { %v1441_v17 = vpop.permute.xlu0 %1440 }
 0x824   : > { %1461 = vmatpush.msra.mxu2 %v1441_v17 }
 0x825   : > { %2474 = vmatmul.msk.f32.vlgmr.msra.gmra.mxu2 %vm1250_vm11, %v1439_v46 }
 0x826   : > { %1574 = vmatpush.msrb.mxu2 %v3337_v41 }
 0x828   : > { %1575 = vmatpush.msrb.mxu2 %v3350_v55 }
 0x82b   : > { %v1491_v18 = vpop.permute.xlu0 %1490 }
 0x856   : > { %v1619_v21 = vpop.xlane.xlu0 %1618 }
 0x857   : > { %2579 = vrcp.f32 %v1619_v21 }
 0x85d   : > { %v2580_v22 = vpop.eup %2579 }
 0x85e   : > { %v1621_v23 = vmul.f32 %v2580_v22, %v2576_v13 }
 0x869   : > { %v1646_v37 = vpop.permute.xlu0 %1645 }
 0x871   : > { %v1851_v39 = vpop.permute.xlu0 %1850 }
 0x8a8   : > { %v1463_v20 = vpop.f32.mrf.mxu2 }
 0x8a9   : > { %2475 = vmatmul.msk.f32.vlgmr.msra.gmra.mxu1 %vm1223_vm9, %v1463_v20 }
 0x8aa   : > { %1640 = vmatpush.msra.mxu1 %v3315_v19 }
 0x8b1   : > { %2477 = vmatmul.msk.f32.vlgmr.msrb.gmra.mxu1 %vm1223_vm9, %v1491_v18 }
 0x8b2   : > { %1753 = vmatpush.msrb.mxu1 %v3277_v49 }
 0x8b4   : > { %1754 = vmatpush.msrb.mxu1 %v3280_v50 }
 0x8b9   : > { %2482 = vmatmul.msk.f32.vlgmr.msra.gmra.mxu1 %vm1250_vm11, %v1621_v23 }
 0x926   : > { %v1486_v44 = vpop.f32.mrf.mxu1 }
 0x927   : > { %v3323_v24 = vadd.f32 %v1486_v44, %v1397_v40  ;;  %v3378_v40 = vld [vmem:[%s3590_s22] ss:$0 sm:$0xff] }
 0x92e   : > { %v1515_v25 = vpop.f32.mrf.mxu1 }
 0x92f   : > { %v1518_v26 = vmul.f32 0.25, %v1515_v25 }
 0x931   : > { %v1519_v27 = vsel %vm1219_vm10, %v1518_v26, -1e+30 }
 0x932   : > { %v1520_v28 = vsel %vm1250_vm11, %v1519_v27, -inf }
 0x933   : > { %1521 = vmax.xlane.f32.xlu1 %v1520_v28 }
 0x936   : > { %v1642_v29 = vpop.f32.mrf.mxu1 }
 0x937   : > { %2487 = vmatmul.msk.f32.vlgmr.msrb.gmra.mxu1 %vm1223_vm9, %v1642_v29 }
 0x94c   : > { %1852 = vrot.lane.b32.xlu1 %v3263_v33, %s2659_s24  ;;  %s3594_s24 = sld [smem:[#allocation19_spill]] (!%p2500_p5) }
 0x9a6   : > { %v1522_v31 = vpop.xlane.xlu1 %1521 }
 0x9a7   : > { %v1523_v32 = vsub.f32 %v1519_v27, %v1522_v31 }
 0x9a9   : > { %v1524_v34 = vmul.f32 1.442695, %v1523_v32 }
 0x9ab   : > { %2581 = vpow2.f32 %v1524_v34 }
 0x9b1   : > { %v2582_v35 = vpop.eup %2581 }
 0x9b2   : > { %v1526_v36 = vsel %vm1250_vm11, %v2582_v35, 0.0 }
 0x9b3   : > { %1527 = vadd.xlane.f32.xlu1 %v1526_v36 }
 0x9b4   : > { %v3342_v49 = vpop.f32.mrf.mxu1 }
 0x9be   : > { %v1853_v38 = vpop.permute.xlu1 %1852 }
 0x9bf   : > { %2492 = vmatpush.xpose.msk.msra.mxu1 %vm1223_vm9, %v1853_v38 }
 0x9c2   : > { %2493 = vmatmul.msk.f32.vlgmr.msra.gmra.mxu1 %vm1223_vm9, %v1851_v39 }
 0x9cc   : > { %1759 = vrot.lane.b32.xlu1 %v3263_v33, %s2658_s30 }
 0xa26   : > { %v1528_v42 = vpop.xlane.xlu1 %1527 }
 0xa27   : > { %2583 = vrcp.f32 %v1528_v42  ;;  %v2014_v42 = vld [vmem:[%s2827_s8 + $0x30] sm:$0xff] }
 0xa2d   : > { %v2584_v45 = vpop.eup %2583 }
 0xa2e   : > { %v1530_v48 = vmul.f32 %v2584_v45, %v2582_v35  ;;  %v2013_v45 = vld [vmem:[%s2827_s8 + $0x28] sm:$0xff] }
 0xa30   : > { %2478 = vmatmul.msk.f32.vlgmr.msrb.gmra.mxu3 %vm1250_vm11, %v1530_v48  ;;  %v2012_v48 = vld [vmem:[%s2827_s8 + $0x20] sm:$0xff] }
 0xa31   : > { %2488 = vmatpush.xpose.msk.msrb.mxu3 %vm1223_vm9, %v1762_v30 }
 0xa38   : > { %2484 = vmatmul.msk.f32.vlgmr.msra.gmra.mxu3 %vm1223_vm9, %v1646_v37 }
 0xa3e   : > { %v1760_v50 = vpop.permute.xlu1 %1759 }
 0xa3f   : > { %v1875_v51 = vpop.f32.mrf.mxu1 }
 0xa40   : > { %v1878_v33 = vmul.f32 0.25, %v1875_v51  ;;  %2489 = vmatmul.msk.f32.vlgmr.msrb.gmra.mxu3 %vm1223_vm9, %v1760_v50  ;;  %v2011_v50 = vld [vmem:[%s2827_s8 + $0x18] sm:$0xff]  ;;  %v2010_v51 = vld [vmem:[%s2827_s8 + $0x10] sm:$0xff] }
 0xa42   : > { %v1879_v52 = vsel %vm1219_vm10, %v1878_v33, -1e+30  ;;  %v2009_v33 = vld [vmem:[%s2827_s8 + $0x8] sm:$0xff] }
 0xa43   : > { %v1880_v54 = vsel %vm1250_vm11, %v1879_v52, -inf }
 0xa44   : > { %1881 = vmax.xlane.f32.xlu1 %v1880_v54 }
 0xab3   : > { %v1554_v56 = vpop.f32.mrf.mxu3 }
 0xab4   : > { %2479 = vmatmul.msk.f32.vlgmr.msrb.gmra.mxu2 %vm1223_vm9, %v1554_v56 }
 0xab7   : > { %v1882_v57 = vpop.xlane.xlu1 %1881 }
 0xab8   : > { %v1883_v58 = vsub.f32 %v1879_v52, %v1882_v57  ;;  %v2008_v52 = vld [vmem:[%s2827_s8] sm:$0xff] }
 0xaba   : > { %v1884_v60 = vmul.f32 1.442695, %v1883_v58 }
 0xabb   : > { %v1670_v61 = vpop.f32.mrf.mxu3 }
 0xabc   : > { %2585 = vpow2.f32 %v1884_v60  ;;  %v1673_v62 = vmul.f32 0.25, %v1670_v61 }
 0xabe   : > { %v1674_v63 = vsel %vm1219_vm10, %v1673_v62, -1e+30 }
 0xabf   : > { %v1675_v0 = vsel %vm1250_vm11, %v1674_v63, -inf }
 0xac0   : > { %1676 = vmax.xlane.f32.xlu2 %v1675_v0 }
 0xac2   : > { %v2586_v1 = vpop.eup %2585 }
 0xac3   : > { %v1784_v2 = vpop.f32.mrf.mxu3  ;;  %v1886_v4 = vsel %vm1250_vm11, %v2586_v1, 0.0 }
 0xac4   : > { %v1787_v5 = vmul.f32 0.25, %v1784_v2  ;;  %1887 = vadd.xlane.f32.xlu1 %v1886_v4  ;;  %v3416_v4 = vld [vmem:[%s801_s27] ss:$0 sm:$0xff] }
 0xac6   : > { %v1788_v6 = vsel %vm1219_vm10, %v1787_v5, -1e+30 }
 0xac7   : > { %v1789_v7 = vsel %vm1250_vm11, %v1788_v6, -inf }
 0xac8   : > { %1790 = vmax.xlane.f32.xlu0 %v1789_v7 }
 0xadd   : > { %1891 = vrot.lane.b32.xlu1 %v3315_v19, %s2660_s7 }
 0xb33   : > { %v1677_v8 = vpop.xlane.xlu2 %1676 }
 0xb34   : > { %v1678_v9 = vsub.f32 %v1674_v63, %v1677_v8 }
 0xb36   : > { %v1679_v10 = vmul.f32 1.442695, %v1678_v9 }
 0xb37   : > { %v1577_v11 = vpop.f32.mrf.mxu2  ;;  %v1888_v46 = vpop.xlane.xlu1 %1887 }
 0xb38   : > { %2587 = vpow2.f32 %v1679_v10  ;;  %v1580_v12 = vadd.f32 %v1577_v11, %v3323_v24 }
 0xb3a   : > { %1581 = vst.msk [vmem:[#allocation3] sm:$0xff] %vm1073_vm4, %v1580_v12 }
 0xb3b   : > { %v1791_v13 = vpop.xlane.xlu0 %1790 }
 0xb3c   : > { %v1792_v14 = vsub.f32 %v1788_v6, %v1791_v13 }
 0xb3e   : > { %v2588_v15 = vpop.eup %2587  ;;  %v1793_v53 = vmul.f32 1.442695, %v1792_v14 }
 0xb3f   : > { %v1681_v16 = vsel %vm1250_vm11, %v2588_v15, 0.0 }
 0xb40   : > { %2589 = vpow2.f32 %v1793_v53  ;;  %1682 = vadd.xlane.f32.xlu2 %v1681_v16  ;;  %v2151_v16 = vld [vmem:[%s2836_s9 + $0x70] sm:$0xff] }
 0xb41   : > { %2591 = vrcp.f32 %v1888_v46  ;;  %v1942_v22 = vld [vmem:[#allocation3] sm:$0xff]  ;;  %v2150_v46 = vld [vmem:[%s2836_s9 + $0x68] sm:$0xff] }
 0xb42   : > { %v1944_v23 = vadd.f32 %v1942_v22, %v3158_v59 }
 0xb44   : > { %v3381_v44 = vadd.f32 %v3378_v40, %v1944_v23  ;;  %v2146_v23 = vld [vmem:[%s2836_s9 + $0x48] sm:$0xff] }
 0xb46   : > { %v2590_v17 = vpop.eup %2589  ;;  %v1954_v24 = vsel %vm1073_vm4, %v3381_v44, 0.0 }
 0xb47   : > { %v1795_v43 = vsel %vm1250_vm11, %v2590_v17, 0.0  ;;  %v2592_v18 = vpop.eup %2591 }
 0xb48   : > { %1796 = vadd.xlane.f32.xlu0 %v1795_v43  ;;  %v1890_v20 = vmul.f32 %v2592_v18, %v2586_v1  ;;  %v2148_v43 = vld [vmem:[%s2836_s9 + $0x58] sm:$0xff] }
 0xb4f   : > { %v1892_v21 = vpop.permute.xlu1 %1891 }
 0xb50   : > { %1912 = vmatpush.msra.mxu3 %v1892_v21  ;;  %v2147_v21 = vld [vmem:[%s2836_s9 + $0x50] sm:$0xff] }
 0xb51   : > { %2494 = vmatmul.msk.f32.vlgmr.msra.gmra.mxu3 %vm1250_vm11, %v1890_v20 }
 0xb58   : > { %1687 = vrot.lane.b32.xlu2 %v3315_v19, %s2655_s2 }
 0xb5c   : > { %1800 = vrot.lane.b32.xlu0 %v3315_v19, %s2658_s30 }
 0xb81   : > { %1955 = vadd.xlane.f32.xlu2 %v1954_v24  ;;  %v2145_v24 = vld [vmem:[%s2836_s9 + $0x40] sm:$0xff] }
 0xbb3   : > { %v1683_v25 = vpop.xlane.xlu2 %1682 }
 0xbb4   : > { %2593 = vrcp.f32 %v1683_v25 }
 0xbba   : > { %v2594_v26 = vpop.eup %2593 }
 0xbbb   : > { %v1685_v19 = vmul.f32 %v2594_v26, %v2588_v15  ;;  %v1688_v27 = vpop.permute.xlu2 %1687  ;;  %v1797_v59 = vpop.xlane.xlu0 %1796  ;;  %v2144_v26 = vld [vmem:[%s2836_s9 + $0x38] sm:$0xff] }
 0xbbc   : > { %1708 = vmatpush.msra.mxu2 %v1688_v27  ;;  %2595 = vrcp.f32 %v1797_v59  ;;  %v2143_v59 = vld [vmem:[%s2836_s9 + $0x30] sm:$0xff] }
 0xbbd   : > { %2485 = vmatmul.msk.f32.vlgmr.msra.gmra.mxu2 %vm1250_vm11, %v1685_v19 }
 0xbc2   : > { %v2596_v28 = vpop.eup %2595 }
 0xbc3   : > { %v1799_v29 = vmul.f32 %v2596_v28, %v2590_v17  ;;  %v2149_v17 = vld [vmem:[%s2836_s9 + $0x60] sm:$0xff] }
 0xbce   : > { %v1801_v30 = vpop.permute.xlu0 %1800 }
 0xbcf   : > { %1821 = vmatpush.msrb.mxu2 %v1801_v30  ;;  %v2142_v30 = vld [vmem:[%s2836_s9 + $0x28] sm:$0xff] }
 0xbd0   : > { %2490 = vmatmul.msk.f32.vlgmr.msrb.gmra.mxu2 %vm1250_vm11, %v1799_v29 }
 0xbd1   : > { %1934 = vmatpush.msra.mxu2 %v3337_v41  ;;  %v2015_v41 = vld [vmem:[%s2827_s8 + $0x38] sm:$0xff]  ;;  %s3591_s8 = scalar_lea.vmem %s3550_s11, %s2784_s26 }
 0xbd2   : > { %v3409_v0 = vld [vmem:[%s3591_s8] ss:$0 sm:$0xff] }
 0xbd3   : > { %1935 = vmatpush.msra.mxu2 %v3350_v55 }
 0xbd4   : > { %v1914_v31 = vpop.f32.mrf.mxu3 }
 0xbd8   : > { %2495 = vmatmul.msk.f32.vlgmr.msra.gmra.mxu2 %vm1223_vm9, %v1914_v31 }
 0xbf4   : > { %v1956_v32 = vpop.xlane.xlu2 %1955 }
 0xbf5   : > { %v1960_v34 = vmul.f32 %v1956_v32, %v3162_v3 }
 0xbf7   : > { %v1962_v35 = vsub.f32 %v3381_v44, %v1960_v34  ;;  %v2141_v34 = vld [vmem:[%s2836_s9 + $0x20] sm:$0xff] }
 0xbf9   : > { %v1964_v36 = vmul.f32 %v1962_v35, %v1962_v35 }
 0xbfb   : > { %v1966_v37 = vsel %vm1073_vm4, %v1964_v36, 0.0  ;;  %v2140_v36 = vld [vmem:[%s2836_s9 + $0x18] sm:$0xff] }
 0xbfc   : > { %1967 = vadd.xlane.f32.xlu1 %v1966_v37 }
 0xc40   : > { %v1710_v38 = vpop.f32.mrf.mxu2 }
 0xc41   : > { %2486 = vmatmul.msk.f32.vlgmr.msra.gmra.mxu0 %vm1223_vm9, %v1710_v38 }
 0xc42   : > { %2034 = vmatpush.msra.mxu0 %v2015_v41 }
 0xc44   : > { %2035 = vmatpush.msra.mxu0 %v2014_v42  ;;  %v2138_v42 = vld [vmem:[%s2836_s9 + $0x8] sm:$0xff] }
 0xc46   : > { %2036 = vmatpush.msra.mxu0 %v2013_v45 }
 0xc48   : > { %2037 = vmatpush.msra.mxu0 %v2012_v48  ;;  %v2137_v48 = vld [vmem:[%s2836_s9] sm:$0xff] }
 0xc4a   : > { %2038 = vmatpush.msra.mxu0 %v2011_v50 }
 0xc4c   : > { %2039 = vmatpush.msra.mxu0 %v2010_v51 }
 0xc4e   : > { %2040 = vmatpush.msra.mxu0 %v2009_v33 }
 0xc50   : > { %2041 = vmatpush.msra.mxu0 %v2008_v52 }
 0xc53   : > { %v1823_v39 = vpop.f32.mrf.mxu2 }
 0xc54   : > { %2491 = vmatmul.msk.f32.vlgmr.msrb.gmra.mxu0 %vm1223_vm9, %v1823_v39  ;;  %v2139_v39 = vld [vmem:[%s2836_s9 + $0x10] sm:$0xff] }
 0xc5b   : > { %v1937_v11 = vpop.f32.mrf.mxu2 }
 0xc6f   : > { %v1968_v54 = vpop.xlane.xlu1 %1967 }
 0xc70   : > { %v1972_v55 = vmul.f32 %v1968_v54, %v3162_v3 }
 0xc72   : > { %v1974_v56 = vadd.f32 1e-06, %v1972_v55 }
 0xc74   : > { %2597 = vrsqrt.f32 %v1974_v56  ;;  %vm1982_vm0 = vweird.f32 %v1974_v56 }
 0xc7a   : > { %v2598_v57 = vpop.eup %2597 }
 0xc7b   : > { %v1977_v58 = vmul.f32 %v2598_v57, %v1974_v56  ;;  %vm1983_vm15 = vweird.f32 %v2598_v57 }
 0xc7c   : > { %vm1984_vm1 = vmor %vm1982_vm0, %vm1983_vm15 }
 0xc7d   : > { %v1978_v60 = vmul.f32 %v2598_v57, %v1977_v58 }
 0xc7f   : > { %v1979_v61 = vmul.f32 0.5, %v1978_v60 }
 0xc81   : > { %v1980_v62 = vsub.f32 1.5, %v1979_v61 }
 0xc83   : > { %v1981_v63 = vmul.f32 %v2598_v57, %v1980_v62 }
 0xc85   : > { %v1985_v1 = vsel %vm1984_vm1, %v2598_v57, %v1981_v63 }
 0xc86   : > { %v1996_v2 = vmul.f32 %v1985_v1, %v1962_v35 }
 0xc88   : > { %v2001_v5 = vmul.f32 %v3409_v0, %v1996_v2 }
 0xc8a   : > { %v2006_v6 = vadd.f32 %v3416_v4, %v2001_v5 }
 0xc8c   : > { %2496 = vmatmul.msk.f32.vlgmr.msra.gmra.mxu0 %vm1073_vm4, %v2006_v6 }
 0xcbe   : > { %v1733_v7 = vpop.f32.mrf.mxu0 }
 0xcbf   : > { %v1757_v8 = vadd.f32 %v3342_v49, %v1733_v7  ;;  %v2152_v49 = vld [vmem:[%s2836_s9 + $0x78] sm:$0xff] }
 0xcc0   : > { %2157 = vmatpush.msrb.mxu1 %v2152_v49 }
 0xcc2   : > { %2158 = vmatpush.msrb.mxu1 %v2151_v16 }
 0xcc4   : > { %2159 = vmatpush.msrb.mxu1 %v2150_v46 }
 0xcc6   : > { %2160 = vmatpush.msrb.mxu1 %v2149_v17 }
 0xcc8   : > { %2161 = vmatpush.msrb.mxu1 %v2148_v43  ;;  %v3465_v43 = vld [vmem:[%s817_s23] ss:$0 sm:$0xff] }
 0xcca   : > { %2162 = vmatpush.msrb.mxu1 %v2147_v21 }
 0xccc   : > { %2163 = vmatpush.msrb.mxu1 %v2146_v23 }
 0xcce   : > { %2164 = vmatpush.msrb.mxu1 %v2145_v24 }
 0xcd0   : > { %2165 = vmatpush.msrb.mxu1 %v2144_v26 }
 0xcd1   : > { %v1846_v9 = vpop.f32.mrf.mxu0 }
 0xcd2   : > { %v1849_v10 = vadd.f32 %v1846_v9, %v1757_v8  ;;  %2166 = vmatpush.msrb.mxu1 %v2143_v59 }
 0xcd4   : > { %v1940_v12 = vadd.f32 %v1937_v11, %v1849_v10  ;;  %2167 = vmatpush.msrb.mxu1 %v2142_v30 }
 0xcd6   : > { %1941 = vst.msk [vmem:[#allocation3 + $0x8] sm:$0xff] %vm1073_vm4, %v1940_v12  ;;  %2168 = vmatpush.msrb.mxu1 %v2141_v34 }
 0xcd8   : > { %2169 = vmatpush.msrb.mxu1 %v2140_v36 }
 0xcda   : > { %2170 = vmatpush.msrb.mxu1 %v2139_v39 }
 0xcdc   : > { %2171 = vmatpush.msrb.mxu1 %v2138_v42 }
 0xcdd   : > { %v1943_v13 = vld [vmem:[#allocation3 + $0x8] sm:$0xff] }
 0xcde   : > { %v1945_v14 = vadd.f32 %v1943_v13, %v3218_v47  ;;  %v3437_v47 = vld [vmem:[%s809_s28] ss:$0 sm:$0xff]  ;;  %2172 = vmatpush.msrb.mxu1 %v2137_v48  ;;  %s3592_s28 = sld [smem:[#allocation17_spill]] (!%p2500_p5) }
 0xce0   : > { %v3425_v15 = vadd.f32 %v3378_v40, %v1945_v14 }
 0xce2   : > { %v1957_v53 = vsel %vm1073_vm4, %v3425_v15, 0.0 }
 0xce3   : > { %1958 = vadd.xlane.f32.xlu0 %v1957_v53 }
 0xd09   : > { %v2043_v18 = vpop.f32.mrf.mxu0 }
 0xd0a   : > { %v3442_v20 = vadd.f32 %v3437_v47, %v2043_v18 }
 0xd0c   : > { %v2051_v22 = vmul.f32 0.70710677, %v3442_v20  ;;  %v2049_v12 = vmul.f32 0.5, %v3442_v20 }
 0xd0e   : > { %v2053_v40 = vmul.f32 %v2051_v22, %v2051_v22 }
 0xd10   : > { %v2054_v25 = vmin.f32 %v2053_v40, 16.0 }
 0xd12   : > { %v2055_v19 = vmul.f32 2.1237322e-06, %v2054_v25  ;;  %v2066_v27 = vmul.f32 3.8918573e-05, %v2054_v25 }
 0xd14   : > { %v2056_v28 = vadd.f32 0.00028619796, %v2055_v19  ;;  %v2067_v29 = vadd.f32 0.001143296, %v2066_v27 }
 0xd16   : > { %v2057_v31 = vmul.f32 %v2056_v28, %v2054_v25  ;;  %v2068_v32 = vmul.f32 %v2067_v29, %v2054_v25 }
 0xd18   : > { %v2069_v35 = vadd.f32 0.014752088, %v2068_v32  ;;  %v2058_v37 = vadd.f32 0.0036580483, %v2057_v31 }
 0xd1a   : > { %v2070_v38 = vmul.f32 %v2069_v35, %v2054_v25  ;;  %v2059_v45 = vmul.f32 %v2058_v37, %v2054_v25 }
 0xd1c   : > { %v2071_v41 = vadd.f32 0.112945676, %v2070_v38  ;;  %v2060_v33 = vadd.f32 0.05243302, %v2059_v45 }
 0xd1e   : > { %v2072_v50 = vmul.f32 %v2071_v41, %v2054_v25  ;;  %v2061_v55 = vmul.f32 %v2060_v33, %v2054_v25 }
 0xd20   : > { %v2073_v51 = vadd.f32 0.4994258, %v2072_v50  ;;  %v2062_v56 = vadd.f32 0.18741608, %v2061_v55 }
 0xd22   : > { %v2074_v52 = vmul.f32 %v2073_v51, %v2054_v25  ;;  %v2063_v58 = vmul.f32 %v2062_v56, %v2054_v25 }
 0xd24   : > { %v2075_v54 = vadd.f32 1.0, %v2074_v52  ;;  %v2064_v63 = vadd.f32 1.1283791, %v2063_v58 }
 0xd26   : > { %2599 = vrcp.f32 %v2075_v54  ;;  %v2087_v62 = vand.u32 2147483648, %v2075_v54  ;;  %v2085_v2 = vand.u32 2147483647, %v2075_v54  ;;  %vm2081_vm3 = vweird.f32 %v2075_v54 }
 0xd27   : > { %v2065_v7 = vmul.f32 %v2064_v63, %v2051_v22 }
 0xd28   : > { %v2088_v6 = vor.u32 1.1754944e-38, %v2087_v62  ;;  %vm2086_vm6 = vcmp.eq.f32.partialorder %v2085_v2, 8.507059e+37 }
 0xd2c   : > { %v2600_v57 = vpop.eup %2599 }
 0xd2d   : > { %v2077_v60 = vmul.f32 %v2600_v57, %v2075_v54  ;;  %vm2082_vm2 = vweird.f32 %v2600_v57 }
 0xd2e   : > { %vm2083_vm5 = vmor %vm2081_vm3, %vm2082_vm2 }
 0xd2f   : > { %v2078_v61 = vsub.f32 1.0, %v2077_v60 }
 0xd31   : > { %v2079_v1 = vmul.f32 %v2600_v57, %v2078_v61 }
 0xd33   : > { %v2080_v5 = vadd.f32 %v2600_v57, %v2079_v1 }
 0xd35   : > { %v2084_v8 = vsel %vm2083_vm5, %v2600_v57, %v2080_v5 }
 0xd36   : > { %v2089_v9 = vsel %vm2086_vm6, %v2088_v6, %v2084_v8 }
 0xd37   : > { %v2090_v10 = vmul.f32 %v2089_v9, %v2065_v7 }
 0xd39   : > { %v2498_v11 = vclamps-f32 %v2090_v10, 1.0 }
 0xd3b   : > { %v2133_v13 = vadd.f32 1.0, %v2498_v11 }
 0xd3d   : > { %v2135_v14 = vmul.f32 %v2133_v13, %v2049_v12 }
 0xd3f   : > { %2173 = vmatmul.f32.vlgmr.msrb.gmra.mxu1 %v2135_v14 }
 0xd56   : > { %v1959_v53 = vpop.xlane.xlu0 %1958 }
 0xd57   : > { %v1961_v49 = vmul.f32 %v1959_v53, %v3162_v3 }
 0xd59   : > { %v1963_v16 = vsub.f32 %v3425_v15, %v1961_v49 }
 0xd5b   : > { %v1965_v46 = vmul.f32 %v1963_v16, %v1963_v16 }
 0xd5d   : > { %v1969_v17 = vsel %vm1073_vm4, %v1965_v46, 0.0 }
 0xd5e   : > { %1970 = vadd.xlane.f32.xlu2 %v1969_v17 }
 0xdbc   : > { %v2174_v18 = vpop.f32.mrf.mxu1 }
 0xdbd   : > { %v2175_v20 = vadd.f32 %v3465_v43, %v2174_v18 }
 0xdbf   : > { %v3469_v21 = vadd.f32 %v2175_v20, %v3381_v44 }
 0xdc1   : > { %2182 = vst.msk [vmem:[#allocation2] sm:$0xff] %vm1073_vm4, %v3469_v21 }
 0xdd1   : > { %v1971_v22 = vpop.xlane.xlu2 %1970 }
 0xdd2   : > { %v1973_v23 = vmul.f32 %v1971_v22, %v3162_v3 }
 0xdd4   : > { %v1975_v40 = vadd.f32 1e-06, %v1973_v23 }
 0xdd6   : > { %2601 = vrsqrt.f32 %v1975_v40  ;;  %vm1992_vm8 = vweird.f32 %v1975_v40 }
 0xddc   : > { %v2602_v24 = vpop.eup %2601 }
 0xddd   : > { %v1987_v25 = vmul.f32 %v2602_v24, %v1975_v40  ;;  %vm1993_vm7 = vweird.f32 %v2602_v24 }
 0xdde   : > { %vm1994_vm9 = vmor %vm1992_vm8, %vm1993_vm7 }
 0xddf   : > { %v1988_v26 = vmul.f32 %v2602_v24, %v1987_v25 }
 0xde1   : > { %v1989_v19 = vmul.f32 0.5, %v1988_v26 }
 0xde3   : > { %v1990_v27 = vsub.f32 1.5, %v1989_v19 }
 0xde5   : > { %v1991_v59 = vmul.f32 %v2602_v24, %v1990_v27 }
 0xde7   : > { %v1995_v28 = vsel %vm1994_vm9, %v2602_v24, %v1991_v59 }
 0xde8   : > { %v1997_v44 = vmul.f32 %v1995_v28, %v1963_v16 }
 0xdea   : > { %v2002_v29 = vmul.f32 %v3409_v0, %v1997_v44 }
 0xdec   : > { %v2007_v30 = vadd.f32 %v3416_v4, %v2002_v29 }
 0xdee   : > { %2497 = vmatmul.msk.f32.gmra.mxu0 %vm1073_vm4, %v2007_v30 }
 0xe6b   : > { %v2046_v31 = vpop.f32.mrf.mxu0 }
 0xe6c   : > { %v2047_v32 = vadd.f32 %v3437_v47, %v2046_v31 }
 0xe6e   : > { %v2052_v34 = vmul.f32 0.70710677, %v2047_v32  ;;  %v2050_v13 = vmul.f32 0.5, %v2047_v32 }
 0xe70   : > { %v2093_v35 = vmul.f32 %v2052_v34, %v2052_v34 }
 0xe72   : > { %v2094_v36 = vmin.f32 %v2093_v35, 16.0 }
 0xe74   : > { %v2095_v37 = vmul.f32 2.1237322e-06, %v2094_v36  ;;  %v2106_v38 = vmul.f32 3.8918573e-05, %v2094_v36 }
 0xe76   : > { %v2096_v39 = vadd.f32 0.00028619796, %v2095_v37  ;;  %v2107_v41 = vadd.f32 0.001143296, %v2106_v38 }
 0xe78   : > { %v2097_v42 = vmul.f32 %v2096_v39, %v2094_v36  ;;  %v2108_v45 = vmul.f32 %v2107_v41, %v2094_v36 }
 0xe7a   : > { %v2109_v48 = vadd.f32 0.014752088, %v2108_v45  ;;  %v2098_v50 = vadd.f32 0.0036580483, %v2097_v42 }
 0xe7c   : > { %v2110_v51 = vmul.f32 %v2109_v48, %v2094_v36  ;;  %v2099_v33 = vmul.f32 %v2098_v50, %v2094_v36 }
 0xe7e   : > { %v2111_v0 = vadd.f32 0.112945676, %v2110_v51  ;;  %v2100_v54 = vadd.f32 0.05243302, %v2099_v33 }
 0xe80   : > { %v2112_v4 = vmul.f32 %v2111_v0, %v2094_v36  ;;  %v2101_v47 = vmul.f32 %v2100_v54, %v2094_v36 }
 0xe82   : > { %v2113_v52 = vadd.f32 0.4994258, %v2112_v4  ;;  %v2102_v57 = vadd.f32 0.18741608, %v2101_v47 }
 0xe84   : > { %v2114_v55 = vmul.f32 %v2113_v52, %v2094_v36  ;;  %v2103_v60 = vmul.f32 %v2102_v57, %v2094_v36 }
 0xe86   : > { %v2115_v56 = vadd.f32 1.0, %v2114_v55  ;;  %v2104_v1 = vadd.f32 1.1283791, %v2103_v60 }
 0xe88   : > { %2603 = vrcp.f32 %v2115_v56  ;;  %v2127_v63 = vand.u32 2147483648, %v2115_v56  ;;  %v2125_v5 = vand.u32 2147483647, %v2115_v56  ;;  %vm2121_vm11 = vweird.f32 %v2115_v56 }
 0xe89   : > { %v2105_v8 = vmul.f32 %v2104_v1, %v2052_v34 }
 0xe8a   : > { %v2128_v7 = vor.u32 1.1754944e-38, %v2127_v63  ;;  %vm2126_vm13 = vcmp.eq.f32.partialorder %v2125_v5, 8.507059e+37 }
 0xe8e   : > { %v2604_v58 = vpop.eup %2603 }
 0xe8f   : > { %v2117_v61 = vmul.f32 %v2604_v58, %v2115_v56  ;;  %vm2122_vm10 = vweird.f32 %v2604_v58 }
 0xe90   : > { %vm2123_vm12 = vmor %vm2121_vm11, %vm2122_vm10 }
 0xe91   : > { %v2118_v62 = vsub.f32 1.0, %v2117_v61 }
 0xe93   : > { %v2119_v2 = vmul.f32 %v2604_v58, %v2118_v62 }
 0xe95   : > { %v2120_v6 = vadd.f32 %v2604_v58, %v2119_v2 }
 0xe97   : > { %v2124_v9 = vsel %vm2123_vm12, %v2604_v58, %v2120_v6 }
 0xe98   : > { %v2129_v10 = vsel %vm2126_vm13, %v2128_v7, %v2124_v9 }
 0xe99   : > { %v2130_v11 = vmul.f32 %v2129_v10, %v2105_v8 }
 0xe9b   : > { %v2499_v12 = vclamps-f32 %v2130_v11, 1.0 }
 0xe9d   : > { %v2134_v14 = vadd.f32 1.0, %v2499_v12 }
 0xe9f   : > { %v2136_v53 = vmul.f32 %v2134_v14, %v2050_v13 }
 0xea1   : > { %2176 = vmatmul.f32.gmra.mxu1 %v2136_v53 }
 0xf1e   : > { %v2177_v49 = vpop.f32.mrf.mxu1 }
 0xf1f   : > { %v2178_v16 = vadd.f32 %v3465_v43, %v2177_v49  ;;  %2187 = sbr.rel (%p2500_p5) target bundleno = 4281 (0x10b9), region = 112 }
 0xf21   : > { %v2181_v46 = vadd.f32 %v2178_v16, %v3425_v15 }
 0xf23   : > { %2183 = vst.msk [vmem:[#allocation2 + $0x8] sm:$0xff] %vm1073_vm4, %v2181_v46 }
 0xf24   : > { %v2190_v17 = vsel %vm1073_vm4, %v3469_v21, 0.0  ;;  %v2193_v18 = vsel %vm1073_vm4, %v2181_v46, 0.0  ;;  %v2251_v27 = vld [vmem:[%s3558_s19 + $0x38] sm:$0xff]  ;;  %v2249_v59 = vld [vmem:[%s3558_s19 + $0x28] sm:$0xff]  ;;  %v2248_v28 = vld [vmem:[%s3558_s19 + $0x20] sm:$0xff] }
 0xf25   : > { %2191 = vadd.xlane.f32.xlu0 %v2190_v17  ;;  %2270 = vmatpush.msra.mxu0 %v2251_v27  ;;  %v2247_v44 = vld [vmem:[%s3558_s19 + $0x18] sm:$0xff]  ;;  %v2246_v29 = vld [vmem:[%s3558_s19 + $0x10] sm:$0xff]  ;;  %v2245_v30 = vld [vmem:[%s3558_s19 + $0x8] sm:$0xff] }
 0xf26   : > { %2519 = vmatpush.msra.mxu1 %v2251_v27  ;;  %v2244_v31 = vld [vmem:[%s3558_s19] sm:$0xff] }
 0xf27   : > { %v2605_v33 = vld [vmem:[%s3592_s28] ss:$0 sm:$0xff] }
 0xf28   : > { %v2606_v54 = vld [vmem:[%s3593_s0] ss:$0 sm:$0xff] }
 0xf29   : > { %v2607_v1 = vld [vmem:[%s3594_s24] ss:$0 sm:$0xff] }
 0xf2d   : > { %2194 = vadd.xlane.f32.xlu0 %v2193_v18 }
 0xf98   : > { %v2192_v20 = vpop.xlane.xlu0 %2191 }
 0xf99   : > { %v2196_v22 = vmul.f32 %v2192_v20, %v3162_v3 }
 0xf9b   : > { %v2198_v23 = vsub.f32 %v3469_v21, %v2196_v22  ;;  %v2250_v21 = vld [vmem:[%s3558_s19 + $0x30] sm:$0xff] }
 0xf9c   : > { %2271 = vmatpush.msra.mxu0 %v2250_v21  ;;  %2520 = vmatpush.msra.mxu1 %v2250_v21 }
 0xf9d   : > { %v2200_v43 = vmul.f32 %v2198_v23, %v2198_v23 }
 0xf9e   : > { %2272 = vmatpush.msra.mxu0 %v2249_v59  ;;  %2521 = vmatpush.msra.mxu1 %v2249_v59 }
 0xf9f   : > { %v2202_v15 = vsel %vm1073_vm4, %v2200_v43, 0.0 }
 0xfa0   : > { %2203 = vadd.xlane.f32.xlu1 %v2202_v15  ;;  %v2195_v40 = vpop.xlane.xlu0 %2194  ;;  %2273 = vmatpush.msra.mxu0 %v2248_v28 }
 0xfa1   : > { %v2197_v24 = vmul.f32 %v2195_v40, %v3162_v3  ;;  %2522 = vmatpush.msra.mxu1 %v2248_v28 }
 0xfa2   : > { %2274 = vmatpush.msra.mxu0 %v2247_v44 }
 0xfa3   : > { %v3489_v25 = vsub.f32 %v2181_v46, %v2197_v24  ;;  %2523 = vmatpush.msra.mxu1 %v2247_v44 }
 0xfa4   : > { %2275 = vmatpush.msra.mxu0 %v2246_v29 }
 0xfa5   : > { %v2201_v26 = vmul.f32 %v3489_v25, %v3489_v25  ;;  %2524 = vmatpush.msra.mxu1 %v2246_v29 }
 0xfa6   : > { %2276 = vmatpush.msra.mxu0 %v2245_v30 }
 0xfa7   : > { %v2205_v19 = vsel %vm1073_vm4, %v2201_v26, 0.0  ;;  %2525 = vmatpush.msra.mxu1 %v2245_v30 }
 0xfa8   : > { %2206 = vadd.xlane.f32.xlu1 %v2205_v19  ;;  %2277 = vmatpush.msra.mxu0 %v2244_v31 }
 0xfa9   : > { %2526 = vmatpush.msra.mxu1 %v2244_v31 }
0x1013   : > { %v2204_v32 = vpop.xlane.xlu1 %2203 }
0x1014   : > { %v2208_v34 = vmul.f32 %v2204_v32, %v3162_v3 }
0x1016   : > { %v2210_v35 = vadd.f32 1e-06, %v2208_v34 }
0x1018   : > { %2608 = vrsqrt.f32 %v2210_v35  ;;  %vm2218_vm15 = vweird.f32 %v2210_v35 }
0x101b   : > { %v2207_v36 = vpop.xlane.xlu1 %2206 }
0x101c   : > { %v2209_v37 = vmul.f32 %v2207_v36, %v3162_v3 }
0x101e   : > { %v2609_v38 = vpop.eup %2608  ;;  %v2211_v39 = vadd.f32 1e-06, %v2209_v37 }
0x101f   : > { %v2213_v41 = vmul.f32 %v2609_v38, %v2210_v35  ;;  %vm2219_vm14 = vweird.f32 %v2609_v38 }
0x1020   : > { %2610 = vrsqrt.f32 %v2211_v39  ;;  %vm2220_vm0 = vmor %vm2218_vm15, %vm2219_vm14  ;;  %vm2228_vm2 = vweird.f32 %v2211_v39 }
0x1021   : > { %v2214_v42 = vmul.f32 %v2609_v38, %v2213_v41 }
0x1023   : > { %v2215_v45 = vmul.f32 0.5, %v2214_v42 }
0x1025   : > { %v2216_v48 = vsub.f32 1.5, %v2215_v45 }
0x1026   : > { %v2611_v50 = vpop.eup %2610 }
0x1027   : > { %v2217_v51 = vmul.f32 %v2609_v38, %v2216_v48  ;;  %v2223_v0 = vmul.f32 %v2611_v50, %v2211_v39  ;;  %vm2229_vm1 = vweird.f32 %v2611_v50 }
0x1028   : > { %vm2230_vm3 = vmor %vm2228_vm2, %vm2229_vm1 }
0x1029   : > { %v2224_v4 = vmul.f32 %v2611_v50, %v2223_v0  ;;  %v2221_v52 = vsel %vm2220_vm0, %v2609_v38, %v2217_v51 }
0x102a   : > { %v2232_v3 = vmul.f32 %v2221_v52, %v2198_v23 }
0x102b   : > { %v2225_v55 = vmul.f32 0.5, %v2224_v4 }
0x102c   : > { %v2237_v56 = vmul.f32 %v2605_v33, %v2232_v3 }
0x102d   : > { %v2226_v47 = vsub.f32 1.5, %v2225_v55 }
0x102e   : > { %v2242_v57 = vadd.f32 %v2606_v54, %v2237_v56 }
0x102f   : > { %v2227_v58 = vmul.f32 %v2611_v50, %v2226_v47 }
0x1030   : > { %2501 = vmatmul.msk.f32.vlgmr.msra.gmra.mxu0 %vm1073_vm4, %v2242_v57 }
0x1031   : > { %v2231_v60 = vsel %vm2230_vm3, %v2611_v50, %v2227_v58 }
0x1032   : > { %v2233_v61 = vmul.f32 %v2231_v60, %v3489_v25 }
0x1034   : > { %v2238_v62 = vmul.f32 %v2605_v33, %v2233_v61 }
0x1036   : > { %v2243_v63 = vadd.f32 %v2606_v54, %v2238_v62 }
0x1038   : > { %2502 = vmatmul.msk.f32.vlgmr.msra.gmra.mxu1 %vm1073_vm4, %v2243_v63 }
0x10ad   : > { %v2279_v2 = vpop.f32.mrf.mxu0 }
0x10ae   : > { %v2280_v5 = vadd.f32 %v2607_v1, %v2279_v2 }
0x10b0   : > { %2285 = vst [vmem:[#allocation4] sm:$0x1] %v2280_v5 }
0x10b5   : > { %v2282_v6 = vpop.f32.mrf.mxu1 }
0x10b6   : > { %v2283_v7 = vadd.f32 %v2607_v1, %v2282_v6 }
0x10b8   : > { %2286 = vst [vmem:[#allocation4 + $0x1] sm:$0x1] %v2283_v7 }
0x10b9 PF: > { %p2531_p6 = scmp.eq.s32.totalorder %s2778_s25, 1  ;;  %s2661_s7 = smov [#allocation4]  }
0x10ba   : > { %s2293_s4 = sshll.u32 %s2661_s7, 4  ;;  %s3595_s3 = sld [smem:[#allocation20_spill]]  ;;  %s2294_s4 = int_to_ptr.vmem [resolvable:$true] %s2293_s4 }
0x10c0   : > { %s2295_s18 = sshll.u32 %s3595_s3, 4  ;;  %s2296_s18 = int_to_ptr.hbm [resolvable:$true] %s2295_s18 }
0x10c1   : > { %2528 = dma.vmem_to_hbm [thread:$0]  (%p2531_p6), %s2294_s4, 32, %s2296_s18, [#allocation5]  }
0x10c2   : > { %2645 = dma.done.wait (%p2531_p6), [#allocation5], 32  }
0x10c3   : > { %2647 = vsyncadd (%p2531_p6), [#allocation5], 4294967264 }
0x10c4 PF: > { %s3596_s8 = sld [smem:[#allocation7_spill]] }
0x10ca   : > { %s32_s2 = sadd.s32 1, %s3596_s8  }
0x10cb   : > { %p29_p7 = scmp.ge.s32.totalorder %s32_s2, 4  }
0x10cd   :  { %31 = sbr.rel (!%p29_p7) target bundleno = 15 (0xf), region = 172 }
0x10d2   :  { %2309 = vsyncpa [#allocation5], 1 }
0x10d3   :  { %2311 = vsyncpa [#allocation5 + $0x1], 1 }

</bundles_post_ra>
